<compile_context>
chip_gen: v7x
topology: tpu7x:2x2x1
jax: 0.10.0
libtpu: 0.0.40
codegen_flags: <defaults>
</compile_context>

<pallas_src>
import jax
import jax.numpy as jnp
from jax.experimental import pallas as pl
from jax.experimental.pallas import tpu as pltpu

IN_DIM = 784      # 28 * 28, used unpadded for activations / kernel I/O
HID1 = 256
HID2 = 64
LAT_DIM = 20
PAD128 = 128      # internal lane-dense width for the 64- and 20-wide dims


def _round_up(n, m):
    return ((n + m - 1) // m) * m


# ----------------------------------------------------------------------------
# Kernel: one batch tile (TM, 784) through all six Linear layers + activations
# ----------------------------------------------------------------------------
def ae_kernel(x_ref,
              w1, b1, w2, b2, w3, b3,   # encoder params (bf16 W, f32 b)
              w4, b4, w5, b5, w6, b6,   # decoder params
              o_ref):

    def layer(h, w_ref, b_ref, act):
        # bf16 MXU inputs, f32 accumulation; bias add + activation in f32.
        y = jnp.dot(h.astype(jnp.bfloat16), w_ref[...],
                    preferred_element_type=jnp.float32) + b_ref[...]
        return act(y)

    relu = lambda v: jnp.maximum(v, 0.0)

    h = x_ref[...]                                   # (TM, 784) f32
    h = layer(h, w1, b1, relu)                       # (TM, 256)
    h = layer(h, w2, b2, relu)                       # (TM, 128)  (64 padded)
    h = layer(h, w3, b3, relu)                       # (TM, 128)  latent (20 padded)
    h = layer(h, w4, b4, relu)                       # (TM, 128)  (64 padded)
    h = layer(h, w5, b5, relu)                       # (TM, 256)
    o_ref[...] = layer(h, w6, b6, jax.nn.sigmoid)    # (TM, 784)


# ----------------------------------------------------------------------------
# Parameter construction / preparation
# ----------------------------------------------------------------------------
def make_ae_params(key):
    """Deterministic init mimicking PyTorch nn.Linear default (U[-1/sqrt(fan_in), +])."""
    dims = [(IN_DIM, HID1), (HID1, HID2), (HID2, LAT_DIM),     # encoder
            (LAT_DIM, HID2), (HID2, HID1), (HID1, IN_DIM)]     # decoder
    params = []
    for i, (fan_in, fan_out) in enumerate(dims):
        kw, kb = jax.random.split(jax.random.fold_in(key, i))
        bound = 1.0 / (fan_in ** 0.5)
        w = jax.random.uniform(kw, (fan_in, fan_out), jnp.float32, -bound, bound)
        b = jax.random.uniform(kb, (1, fan_out), jnp.float32, -bound, bound)
        params.append((w, b))
    return params


def prepare_params(params):
    """Zero-pad the narrow internal dims to 128 lanes and cast weights to bf16.

    Exact: padded bias/weight columns produce ReLU(0)=0 activations, and the
    matching (zero) weight rows of the next layer contribute nothing.  The
    784-wide input and output dims are left unpadded.
    """
    (w1, b1), (w2, b2), (w3, b3), (w4, b4), (w5, b5), (w6, b6) = params

    pc = PAD128 - HID2      # 64 -> 128
    pl_ = PAD128 - LAT_DIM  # 20 -> 128

    w2p = jnp.pad(w2, ((0, 0), (0, pc)));   b2p = jnp.pad(b2, ((0, 0), (0, pc)))
    w3p = jnp.pad(w3, ((0, pc), (0, pl_))); b3p = jnp.pad(b3, ((0, 0), (0, pl_)))
    w4p = jnp.pad(w4, ((0, pl_), (0, pc))); b4p = jnp.pad(b4, ((0, 0), (0, pc)))
    w5p = jnp.pad(w5, ((0, pc), (0, 0)))

    prepped = []
    for w, bias in [(w1, b1), (w2p, b2p), (w3p, b3p),
                    (w4p, b4p), (w5p, b5), (w6, b6)]:
        prepped.append((w.astype(jnp.bfloat16), bias.astype(jnp.float32)))
    return prepped


# ----------------------------------------------------------------------------
# Wrapper
# ----------------------------------------------------------------------------
def _batch_dim_semantics():
    """CORE_PARALLEL on v7x (2 TensorCores/chip); plain PARALLEL elsewhere."""
    try:
        kind = jax.devices()[0].device_kind.lower()
    except Exception:
        kind = ""
    if "v7" in kind:
        return (pltpu.CORE_PARALLEL,)
    return (pltpu.PARALLEL,)


def ae_forward(x_nchw, prepped_params, *, tm=1024):
    """x_nchw: (B, 1, 28, 28) f32 -> (B, 1, 28, 28) f32."""
    b = x_nchw.shape[0]
    x = x_nchw.reshape(b, IN_DIM).astype(jnp.float32)   # no feature padding

    # Batch tile: multiple of 8 sublanes; shrink adaptively so ragged-batch
    # padding waste stays below ~12.5% (avoids padding e.g. 300 rows to 1024).
    tm = _round_up(max(8, min(tm, _round_up(b, 8))), 8)
    while tm > 8 and (_round_up(b, tm) - b) > 0.125 * b:
        tm = _round_up(max(8, tm // 2), 8)
    bp = _round_up(b, tm)
    if bp != b:
        x = jnp.pad(x, ((0, bp - b), (0, 0)))

    flat_params = []
    for w, bias in prepped_params:
        flat_params.extend([w, bias])

    # Block last dim == full array dim (784) is legal; rows are multiples of 8.
    x_spec = pl.BlockSpec((tm, IN_DIM), lambda i: (i, 0))
    # Full-array blocks with constant index_maps: weights stay VMEM-resident
    # across batch tiles (DMA'd once, never re-fetched).
    param_specs = [pl.BlockSpec(p.shape, lambda i: (0, 0)) for p in flat_params]

    # VMEM budget: double-buffered f32 in/out tiles + resident params + headroom
    # for in-kernel intermediates.  At tm=1024 this is ~31 MiB, inside every
    # generation's limit (v7x has 64 MiB physical; keep <= ~48 MiB there).
    act_tile_bytes = tm * IN_DIM * 4
    param_bytes = sum(int(p.size) * p.dtype.itemsize for p in flat_params)
    vmem_limit = min(int(4 * act_tile_bytes + 2 * param_bytes + (16 << 20)),
                     60 << 20)

    out = pl.pallas_call(
        ae_kernel,
        out_shape=jax.ShapeDtypeStruct((bp, IN_DIM), jnp.float32),
        grid=(bp // tm,),
        in_specs=[x_spec] + param_specs,
        out_specs=x_spec,
        compiler_params=pltpu.CompilerParams(
            dimension_semantics=_batch_dim_semantics(),
            vmem_limit_bytes=vmem_limit,
        ),
    )(x, *flat_params)

    return out[:b].reshape(b, 1, 28, 28)


# ----------------------------------------------------------------------------
# Plain-JAX reference (same bf16-matmul / f32-accumulate numerics as the kernel)
# ----------------------------------------------------------------------------
def ae_reference(x_nchw, params):
    b = x_nchw.shape[0]
    h = x_nchw.reshape(b, IN_DIM).astype(jnp.float32)
    for i, (w, bias) in enumerate(params):
        h = jnp.dot(h.astype(jnp.bfloat16), w.astype(jnp.bfloat16),
                    preferred_element_type=jnp.float32) + bias
        h = jnp.maximum(h, 0.0) if i < 5 else jax.nn.sigmoid(h)
    return h.reshape(b, 1, 28, 28)


if __name__ == "__main__":
    key = jax.random.PRNGKey(0)
    k_x, k_p = jax.random.split(key)

    batch = 8
    x = jax.random.normal(k_x, (batch, 1, 28, 28), dtype=jnp.float32)
    params = make_ae_params(k_p)
    prepped = prepare_params(params)

    out = jax.block_until_ready(ae_forward(x, prepped))
    ref = jax.block_until_ready(ae_reference(x, params))

    assert out.shape == (batch, 1, 28, 28), out.shape
    max_err = float(jnp.max(jnp.abs(out - ref)))
    assert jnp.allclose(out, ref, atol=1e-2, rtol=1e-2), max_err
    print("KERNEL_OK")
</pallas_src>

<mosaic_0001>
module attributes {stable_mosaic.version = 11 : i64} {
  func.func @ae_kernel(%arg0: i32, %arg1: memref<8x784xf32, #tpu.memory_space<vmem>>, %arg2: memref<784x256xbf16, #tpu.memory_space<vmem>>, %arg3: memref<1x256xf32, #tpu.memory_space<vmem>>, %arg4: memref<256x128xbf16, #tpu.memory_space<vmem>>, %arg5: memref<1x128xf32, #tpu.memory_space<vmem>>, %arg6: memref<128x128xbf16, #tpu.memory_space<vmem>>, %arg7: memref<1x128xf32, #tpu.memory_space<vmem>>, %arg8: memref<128x128xbf16, #tpu.memory_space<vmem>>, %arg9: memref<1x128xf32, #tpu.memory_space<vmem>>, %arg10: memref<128x256xbf16, #tpu.memory_space<vmem>>, %arg11: memref<1x256xf32, #tpu.memory_space<vmem>>, %arg12: memref<256x784xbf16, #tpu.memory_space<vmem>>, %arg13: memref<1x784xf32, #tpu.memory_space<vmem>>, %arg14: memref<8x784xf32, #tpu.memory_space<vmem>>) attributes {dimension_semantics = [#tpu.dimension_semantics<parallel>], iteration_bounds = array<i64: 1>, scalar_prefetch = 0 : i64, scratch_operands = 0 : i64, tpu.core_type = #tpu.core_type<tc>, window_params = [{transform_indices = @transform_0, window_bounds = array<i64: 8, 784>}, {pipeline_mode = #tpu.pipeline_mode<synchronous>, transform_indices = @transform_1, window_bounds = array<i64: 784, 256>}, {pipeline_mode = #tpu.pipeline_mode<synchronous>, transform_indices = @transform_2, window_bounds = array<i64: 1, 256>}, {pipeline_mode = #tpu.pipeline_mode<synchronous>, transform_indices = @transform_3, window_bounds = array<i64: 256, 128>}, {pipeline_mode = #tpu.pipeline_mode<synchronous>, transform_indices = @transform_4, window_bounds = array<i64: 1, 128>}, {pipeline_mode = #tpu.pipeline_mode<synchronous>, transform_indices = @transform_5, window_bounds = array<i64: 128, 128>}, {pipeline_mode = #tpu.pipeline_mode<synchronous>, transform_indices = @transform_6, window_bounds = array<i64: 1, 128>}, {pipeline_mode = #tpu.pipeline_mode<synchronous>, transform_indices = @transform_7, window_bounds = array<i64: 128, 128>}, {pipeline_mode = #tpu.pipeline_mode<synchronous>, transform_indices = @transform_8, window_bounds = array<i64: 1, 128>}, {pipeline_mode = #tpu.pipeline_mode<synchronous>, transform_indices = @transform_9, window_bounds = array<i64: 128, 256>}, {pipeline_mode = #tpu.pipeline_mode<synchronous>, transform_indices = @transform_10, window_bounds = array<i64: 1, 256>}, {pipeline_mode = #tpu.pipeline_mode<synchronous>, transform_indices = @transform_11, window_bounds = array<i64: 256, 784>}, {pipeline_mode = #tpu.pipeline_mode<synchronous>, transform_indices = @transform_12, window_bounds = array<i64: 1, 784>}, {transform_indices = @transform_13, window_bounds = array<i64: 8, 784>}]} {
    %c0 = arith.constant 0 : index
    %c0_0 = arith.constant 0 : index
    %0 = vector.load %arg1[%c0, %c0_0] : memref<8x784xf32, #tpu.memory_space<vmem>>, vector<8x784xf32>
    %1 = arith.truncf %0 : vector<8x784xf32> to vector<8x784xbf16>
    %c0_1 = arith.constant 0 : index
    %c0_2 = arith.constant 0 : index
    %2 = vector.load %arg2[%c0_1, %c0_2] : memref<784x256xbf16, #tpu.memory_space<vmem>>, vector<784x256xbf16>
    %cst = arith.constant dense<0.000000e+00> : vector<8x256xf32>
    %3 = tpu.matmul %1, %2, %cst {dimension_numbers = #tpu.dot_dimension_numbers<[1], [0], [0], [1], [0, 0, 1, 1], [], []>} : vector<8x784xbf16>, vector<784x256xbf16>, vector<8x256xf32> -> vector<8x256xf32>
    %c0_3 = arith.constant 0 : index
    %c0_4 = arith.constant 0 : index
    %4 = vector.load %arg3[%c0_3, %c0_4] : memref<1x256xf32, #tpu.memory_space<vmem>>, vector<1x256xf32>
    %5 = vector.broadcast %4 : vector<1x256xf32> to vector<8x256xf32>
    %6 = arith.addf %3, %5 : vector<8x256xf32>
    %cst_5 = arith.constant 0.000000e+00 : f32
    %7 = vector.broadcast %cst_5 : f32 to vector<8x256xf32>
    %8 = arith.maximumf %6, %7 : vector<8x256xf32>
    %9 = arith.truncf %8 : vector<8x256xf32> to vector<8x256xbf16>
    %c0_6 = arith.constant 0 : index
    %c0_7 = arith.constant 0 : index
    %10 = vector.load %arg4[%c0_6, %c0_7] : memref<256x128xbf16, #tpu.memory_space<vmem>>, vector<256x128xbf16>
    %cst_8 = arith.constant dense<0.000000e+00> : vector<8x128xf32>
    %11 = tpu.matmul %9, %10, %cst_8 {dimension_numbers = #tpu.dot_dimension_numbers<[1], [0], [0], [1], [0, 0, 1, 1], [], []>} : vector<8x256xbf16>, vector<256x128xbf16>, vector<8x128xf32> -> vector<8x128xf32>
    %c0_9 = arith.constant 0 : index
    %c0_10 = arith.constant 0 : index
    %12 = vector.load %arg5[%c0_9, %c0_10] : memref<1x128xf32, #tpu.memory_space<vmem>>, vector<1x128xf32>
    %13 = vector.broadcast %12 : vector<1x128xf32> to vector<8x128xf32>
    %14 = arith.addf %11, %13 : vector<8x128xf32>
    %cst_11 = arith.constant 0.000000e+00 : f32
    %15 = vector.broadcast %cst_11 : f32 to vector<8x128xf32>
    %16 = arith.maximumf %14, %15 : vector<8x128xf32>
    %17 = arith.truncf %16 : vector<8x128xf32> to vector<8x128xbf16>
    %c0_12 = arith.constant 0 : index
    %c0_13 = arith.constant 0 : index
    %18 = vector.load %arg6[%c0_12, %c0_13] : memref<128x128xbf16, #tpu.memory_space<vmem>>, vector<128x128xbf16>
    %cst_14 = arith.constant dense<0.000000e+00> : vector<8x128xf32>
    %19 = tpu.matmul %17, %18, %cst_14 {dimension_numbers = #tpu.dot_dimension_numbers<[1], [0], [0], [1], [0, 0, 1, 1], [], []>} : vector<8x128xbf16>, vector<128x128xbf16>, vector<8x128xf32> -> vector<8x128xf32>
    %c0_15 = arith.constant 0 : index
    %c0_16 = arith.constant 0 : index
    %20 = vector.load %arg7[%c0_15, %c0_16] : memref<1x128xf32, #tpu.memory_space<vmem>>, vector<1x128xf32>
    %21 = vector.broadcast %20 : vector<1x128xf32> to vector<8x128xf32>
    %22 = arith.addf %19, %21 : vector<8x128xf32>
    %cst_17 = arith.constant 0.000000e+00 : f32
    %23 = vector.broadcast %cst_17 : f32 to vector<8x128xf32>
    %24 = arith.maximumf %22, %23 : vector<8x128xf32>
    %25 = arith.truncf %24 : vector<8x128xf32> to vector<8x128xbf16>
    %c0_18 = arith.constant 0 : index
    %c0_19 = arith.constant 0 : index
    %26 = vector.load %arg8[%c0_18, %c0_19] : memref<128x128xbf16, #tpu.memory_space<vmem>>, vector<128x128xbf16>
    %cst_20 = arith.constant dense<0.000000e+00> : vector<8x128xf32>
    %27 = tpu.matmul %25, %26, %cst_20 {dimension_numbers = #tpu.dot_dimension_numbers<[1], [0], [0], [1], [0, 0, 1, 1], [], []>} : vector<8x128xbf16>, vector<128x128xbf16>, vector<8x128xf32> -> vector<8x128xf32>
    %c0_21 = arith.constant 0 : index
    %c0_22 = arith.constant 0 : index
    %28 = vector.load %arg9[%c0_21, %c0_22] : memref<1x128xf32, #tpu.memory_space<vmem>>, vector<1x128xf32>
    %29 = vector.broadcast %28 : vector<1x128xf32> to vector<8x128xf32>
    %30 = arith.addf %27, %29 : vector<8x128xf32>
    %cst_23 = arith.constant 0.000000e+00 : f32
    %31 = vector.broadcast %cst_23 : f32 to vector<8x128xf32>
    %32 = arith.maximumf %30, %31 : vector<8x128xf32>
    %33 = arith.truncf %32 : vector<8x128xf32> to vector<8x128xbf16>
    %c0_24 = arith.constant 0 : index
    %c0_25 = arith.constant 0 : index
    %34 = vector.load %arg10[%c0_24, %c0_25] : memref<128x256xbf16, #tpu.memory_space<vmem>>, vector<128x256xbf16>
    %cst_26 = arith.constant dense<0.000000e+00> : vector<8x256xf32>
    %35 = tpu.matmul %33, %34, %cst_26 {dimension_numbers = #tpu.dot_dimension_numbers<[1], [0], [0], [1], [0, 0, 1, 1], [], []>} : vector<8x128xbf16>, vector<128x256xbf16>, vector<8x256xf32> -> vector<8x256xf32>
    %c0_27 = arith.constant 0 : index
    %c0_28 = arith.constant 0 : index
    %36 = vector.load %arg11[%c0_27, %c0_28] : memref<1x256xf32, #tpu.memory_space<vmem>>, vector<1x256xf32>
    %37 = vector.broadcast %36 : vector<1x256xf32> to vector<8x256xf32>
    %38 = arith.addf %35, %37 : vector<8x256xf32>
    %cst_29 = arith.constant 0.000000e+00 : f32
    %39 = vector.broadcast %cst_29 : f32 to vector<8x256xf32>
    %40 = arith.maximumf %38, %39 : vector<8x256xf32>
    %41 = arith.truncf %40 : vector<8x256xf32> to vector<8x256xbf16>
    %c0_30 = arith.constant 0 : index
    %c0_31 = arith.constant 0 : index
    %42 = vector.load %arg12[%c0_30, %c0_31] : memref<256x784xbf16, #tpu.memory_space<vmem>>, vector<256x784xbf16>
    %cst_32 = arith.constant dense<0.000000e+00> : vector<8x784xf32>
    %43 = tpu.matmul %41, %42, %cst_32 {dimension_numbers = #tpu.dot_dimension_numbers<[1], [0], [0], [1], [0, 0, 1, 1], [], []>} : vector<8x256xbf16>, vector<256x784xbf16>, vector<8x784xf32> -> vector<8x784xf32>
    %c0_33 = arith.constant 0 : index
    %c0_34 = arith.constant 0 : index
    %44 = vector.load %arg13[%c0_33, %c0_34] : memref<1x784xf32, #tpu.memory_space<vmem>>, vector<1x784xf32>
    %45 = vector.broadcast %44 : vector<1x784xf32> to vector<8x784xf32>
    %46 = arith.addf %43, %45 : vector<8x784xf32>
    %47 = arith.negf %46 : vector<8x784xf32>
    %48 = math.exp %47 : vector<8x784xf32>
    %cst_35 = arith.constant 1.000000e+00 : f32
    %49 = vector.broadcast %cst_35 : f32 to vector<8x784xf32>
    %50 = arith.addf %49, %48 : vector<8x784xf32>
    %51 = arith.divf %49, %50 : vector<8x784xf32>
    %c0_36 = arith.constant 0 : index
    %c0_37 = arith.constant 0 : index
    %52 = vector.load %arg14[%c0_36, %c0_37] : memref<8x784xf32, #tpu.memory_space<vmem>>, vector<8x784xf32>
    tpu.vector_store %arg14[%c0_36, %c0_37], %51 {strides = array<i32>} : memref<8x784xf32, #tpu.memory_space<vmem>>, vector<8x784xf32>,
    return
  }
  func.func @transform_0(%arg0: i32) -> (i32, i32) {
    %c0_i32 = arith.constant 0 : i32
    %c0_i32_0 = arith.constant 0 : i32
    return %arg0, %c0_i32 : i32, i32
  }
  func.func @transform_1(%arg0: i32) -> (i32, i32) {
    %c0_i32 = arith.constant 0 : i32
    %c0_i32_0 = arith.constant 0 : i32
    %c0_i32_1 = arith.constant 0 : i32
    return %c0_i32, %c0_i32_0 : i32, i32
  }
  func.func @transform_2(%arg0: i32) -> (i32, i32) {
    %c0_i32 = arith.constant 0 : i32
    %c0_i32_0 = arith.constant 0 : i32
    %c0_i32_1 = arith.constant 0 : i32
    return %c0_i32, %c0_i32_0 : i32, i32
  }
  func.func @transform_3(%arg0: i32) -> (i32, i32) {
    %c0_i32 = arith.constant 0 : i32
    %c0_i32_0 = arith.constant 0 : i32
    %c0_i32_1 = arith.constant 0 : i32
    return %c0_i32, %c0_i32_0 : i32, i32
  }
  func.func @transform_4(%arg0: i32) -> (i32, i32) {
    %c0_i32 = arith.constant 0 : i32
    %c0_i32_0 = arith.constant 0 : i32
    %c0_i32_1 = arith.constant 0 : i32
    return %c0_i32, %c0_i32_0 : i32, i32
  }
  func.func @transform_5(%arg0: i32) -> (i32, i32) {
    %c0_i32 = arith.constant 0 : i32
    %c0_i32_0 = arith.constant 0 : i32
    %c0_i32_1 = arith.constant 0 : i32
    return %c0_i32, %c0_i32_0 : i32, i32
  }
  func.func @transform_6(%arg0: i32) -> (i32, i32) {
    %c0_i32 = arith.constant 0 : i32
    %c0_i32_0 = arith.constant 0 : i32
    %c0_i32_1 = arith.constant 0 : i32
    return %c0_i32, %c0_i32_0 : i32, i32
  }
  func.func @transform_7(%arg0: i32) -> (i32, i32) {
    %c0_i32 = arith.constant 0 : i32
    %c0_i32_0 = arith.constant 0 : i32
    %c0_i32_1 = arith.constant 0 : i32
    return %c0_i32, %c0_i32_0 : i32, i32
  }
  func.func @transform_8(%arg0: i32) -> (i32, i32) {
    %c0_i32 = arith.constant 0 : i32
    %c0_i32_0 = arith.constant 0 : i32
    %c0_i32_1 = arith.constant 0 : i32
    return %c0_i32, %c0_i32_0 : i32, i32
  }
  func.func @transform_9(%arg0: i32) -> (i32, i32) {
    %c0_i32 = arith.constant 0 : i32
    %c0_i32_0 = arith.constant 0 : i32
    %c0_i32_1 = arith.constant 0 : i32
    return %c0_i32, %c0_i32_0 : i32, i32
  }
  func.func @transform_10(%arg0: i32) -> (i32, i32) {
    %c0_i32 = arith.constant 0 : i32
    %c0_i32_0 = arith.constant 0 : i32
    %c0_i32_1 = arith.constant 0 : i32
    return %c0_i32, %c0_i32_0 : i32, i32
  }
  func.func @transform_11(%arg0: i32) -> (i32, i32) {
    %c0_i32 = arith.constant 0 : i32
    %c0_i32_0 = arith.constant 0 : i32
    %c0_i32_1 = arith.constant 0 : i32
    return %c0_i32, %c0_i32_0 : i32, i32
  }
  func.func @transform_12(%arg0: i32) -> (i32, i32) {
    %c0_i32 = arith.constant 0 : i32
    %c0_i32_0 = arith.constant 0 : i32
    %c0_i32_1 = arith.constant 0 : i32
    return %c0_i32, %c0_i32_0 : i32, i32
  }
  func.func @transform_13(%arg0: i32) -> (i32, i32) {
    %c0_i32 = arith.constant 0 : i32
    %c0_i32_0 = arith.constant 0 : i32
    return %arg0, %c0_i32 : i32, i32
  }
}

</mosaic_0001>

<bundles_post_ra>
// kernel: tpu_custom_call.1
= control target key start
LH: loop header
LB: loop body
LE: loop exit
PB: predicated region body
PF: predicated region fallthrough
CT: control target
= control target key end

     0   :  { %s4120_s0 = inlined_call_operand.vmem [shape: f32[8,784], index: 0, kind: input, shape index: {}]   ;;  %s4121_s1 = inlined_call_operand.vmem [shape: bf16[784,256], index: 1, kind: input, shape index: {}]   ;;  %s4122_s2 = inlined_call_operand.vmem [shape: f32[1,256], index: 2, kind: input, shape index: {}]   ;;  %s4123_s3 = inlined_call_operand.vmem [shape: bf16[256,128], index: 3, kind: input, shape index: {}]   ;;  %s4124_s4 = inlined_call_operand.vmem [shape: f32[1,128], index: 4, kind: input, shape index: {}]   ;;  %s4125_s5 = inlined_call_operand.vmem [shape: bf16[128,128], index: 5, kind: input, shape index: {}]   ;;  %s4126_s6 = inlined_call_operand.vmem [shape: f32[1,128], index: 6, kind: input, shape index: {}]   ;;  %s4127_s7 = inlined_call_operand.vmem [shape: bf16[128,128], index: 7, kind: input, shape index: {}]   ;;  %s4128_s8 = inlined_call_operand.vmem [shape: f32[1,128], index: 8, kind: input, shape index: {}]   ;;  %s4129_s9 = inlined_call_operand.vmem [shape: bf16[128,256], index: 9, kind: input, shape index: {}]   ;;  %s4130_s10 = inlined_call_operand.vmem [shape: f32[1,256], index: 10, kind: input, shape index: {}]   ;;  %s4131_s11 = inlined_call_operand.vmem [shape: bf16[256,784], index: 11, kind: input, shape index: {}]   ;;  %s4132_s12 = inlined_call_operand.vmem [shape: f32[1,784], index: 12, kind: input, shape index: {}]   ;;  %s4133_s13 = inlined_call_operand.hbm [shape: f32[8,784], index: 13, kind: output, shape index: {}]  }
   0x1   :  { %v2744_v0 = vld [vmem:[%s4121_s1 + $0x4] ss:$8 sps:$4 sm:$0xff]   ;;  %v2746_v1 = vld [vmem:[%s4121_s1] ss:$8 sps:$4 sm:$0xff]   ;;  %v2747_v2 = vld [vmem:[%s4121_s1 + $0x14] ss:$8 sps:$4 sm:$0xff]  }
   0x2   :  { %664 = vmatprep.subr.bf16.mxu0 %v2744_v0  ;;  %v2749_v3 = vld [vmem:[%s4121_s1 + $0x10] ss:$8 sps:$4 sm:$0xff]   ;;  %v2750_v4 = vld [vmem:[%s4121_s1 + $0x24] ss:$8 sps:$4 sm:$0xff]   ;;  %v2752_v5 = vld [vmem:[%s4121_s1 + $0x20] ss:$8 sps:$4 sm:$0xff]  }
   0x3   :  { %665 = vmatpush1.bf16.msra.mxu0 %v2746_v1  ;;  %v2753_v6 = vld [vmem:[%s4121_s1 + $0x34] ss:$8 sps:$4 sm:$0xff]   ;;  %v2755_v7 = vld [vmem:[%s4121_s1 + $0x30] ss:$8 sps:$4 sm:$0xff]   ;;  %v2756_v8 = vld [vmem:[%s4121_s1 + $0x44] ss:$8 sps:$4 sm:$0xff]  }
   0x4   :  { %666 = vmatprep.subr.bf16.mxu0 %v2747_v2  ;;  %v2758_v9 = vld [vmem:[%s4121_s1 + $0x40] ss:$8 sps:$4 sm:$0xff]   ;;  %v2759_v10 = vld [vmem:[%s4121_s1 + $0x54] ss:$8 sps:$4 sm:$0xff]   ;;  %v2761_v11 = vld [vmem:[%s4121_s1 + $0x50] ss:$8 sps:$4 sm:$0xff]  }
   0x5   :  { %v2762_v12 = vld [vmem:[%s4121_s1 + $0x64] ss:$8 sps:$4 sm:$0xff]   ;;  %v2764_v15 = vld [vmem:[%s4121_s1 + $0x60] ss:$8 sps:$4 sm:$0xff]   ;;  %v2765_v16 = vld [vmem:[%s4121_s1 + $0x74] ss:$8 sps:$4 sm:$0xff]  }
   0x6   :  { %v47_v13 = vld [vmem:[%s4120_s0 + $0x8] sm:$0xff]  ;;  %v2767_v17 = vld [vmem:[%s4121_s1 + $0x70] ss:$8 sps:$4 sm:$0xff]   ;;  %v2771_v20 = vld [vmem:[%s4121_s1 + $0x94] ss:$8 sps:$4 sm:$0xff]  }
   0x7   :  { %667 = vmatpush1.bf16.msra.mxu0 %v2749_v3  ;;  %v54_v14 = vpack.c.bf16 %v47_v13, %v47_v13  ;;  %v2768_v18 = vld [vmem:[%s4121_s1 + $0x84] ss:$8 sps:$4 sm:$0xff]   ;;  %v2770_v19 = vld [vmem:[%s4121_s1 + $0x80] ss:$8 sps:$4 sm:$0xff]   ;;  %v2773_v21 = vld [vmem:[%s4121_s1 + $0x90] ss:$8 sps:$4 sm:$0xff]  }
   0x8   :  { %668 = vmatprep.subr.bf16.mxu0 %v2750_v4  ;;  %v2774_v22 = vld [vmem:[%s4121_s1 + $0xa4] ss:$8 sps:$4 sm:$0xff]   ;;  %v2776_v23 = vld [vmem:[%s4121_s1 + $0xa0] ss:$8 sps:$4 sm:$0xff]   ;;  %v2777_v24 = vld [vmem:[%s4121_s1 + $0xb4] ss:$8 sps:$4 sm:$0xff]  }
   0x9   :  { %696 = vmatprep.mubr.bf16.mxu0 %v54_v14  ;;  %v2779_v25 = vld [vmem:[%s4121_s1 + $0xb0] ss:$8 sps:$4 sm:$0xff]   ;;  %v2780_v26 = vld [vmem:[%s4121_s1 + $0xc4] ss:$8 sps:$4 sm:$0xff]   ;;  %v2782_v27 = vld [vmem:[%s4121_s1 + $0xc0] ss:$8 sps:$4 sm:$0xff]  }
   0xa   :  { %v2783_v28 = vld [vmem:[%s4121_s1 + $0xd4] ss:$8 sps:$4 sm:$0xff]   ;;  %v2785_v29 = vld [vmem:[%s4121_s1 + $0xd0] ss:$8 sps:$4 sm:$0xff]   ;;  %v2786_v30 = vld [vmem:[%s4121_s1 + $0xe4] ss:$8 sps:$4 sm:$0xff]  }
   0xb   :  { %669 = vmatpush1.bf16.msra.mxu0 %v2752_v5  ;;  %v2788_v31 = vld [vmem:[%s4121_s1 + $0xe0] ss:$8 sps:$4 sm:$0xff]   ;;  %v2789_v32 = vld [vmem:[%s4121_s1 + $0xf4] ss:$8 sps:$4 sm:$0xff]   ;;  %v2791_v33 = vld [vmem:[%s4121_s1 + $0xf0] ss:$8 sps:$4 sm:$0xff]  }
   0xc   :  { %670 = vmatprep.subr.bf16.mxu0 %v2753_v6  ;;  %v2794_v34 = vld [vmem:[%s4121_s1 + $0x104] ss:$8 sps:$4 sm:$0xff]   ;;  %v49_v36 = vld [vmem:[%s4120_s0 + $0x18] sm:$0xff]  ;;  %v2792_v38 = vld [vmem:[%s4121_s1 + $0x100] ss:$8 sps:$4 sm:$0xff]  }
   0xd   :  { %v46_v35 = vld [vmem:[%s4120_s0] sm:$0xff]  ;;  %v56_v39 = vpack.c.bf16 %v49_v36, %v49_v36  ;;  %v2797_v40 = vld [vmem:[%s4121_s1 + $0x114] ss:$8 sps:$4 sm:$0xff]   ;;  %v2795_v41 = vld [vmem:[%s4121_s1 + $0x110] ss:$8 sps:$4 sm:$0xff]  }
   0xe   :  { %v53_v37 = vpack.c.bf16 %v46_v35, %v46_v35  ;;  %v2800_v42 = vld [vmem:[%s4121_s1 + $0x124] ss:$8 sps:$4 sm:$0xff]   ;;  %v2798_v43 = vld [vmem:[%s4121_s1 + $0x120] ss:$8 sps:$4 sm:$0xff]   ;;  %v2803_v44 = vld [vmem:[%s4121_s1 + $0x134] ss:$8 sps:$4 sm:$0xff]  }
   0xf   :  { %671 = vmatpush1.bf16.msra.mxu0 %v2755_v7  ;;  %v2801_v45 = vld [vmem:[%s4121_s1 + $0x130] ss:$8 sps:$4 sm:$0xff]   ;;  %v2806_v46 = vld [vmem:[%s4121_s1 + $0x144] ss:$8 sps:$4 sm:$0xff]   ;;  %v2804_v50 = vld [vmem:[%s4121_s1 + $0x140] ss:$8 sps:$4 sm:$0xff]  }
  0x10   :  { %672 = vmatprep.subr.bf16.mxu0 %v2756_v8  ;;  %v2891_v47 = vld [vmem:[%s4123_s3 + $0x40] sm:$0xff]   ;;  %v2893_v49 = vld [vmem:[%s4123_s3 + $0x48] sm:$0xff]   ;;  %v2809_v51 = vld [vmem:[%s4121_s1 + $0x154] ss:$8 sps:$4 sm:$0xff]  }
  0x11   :  { %v2892_v48 = vld [vmem:[%s4123_s3] sm:$0xff]   ;;  %2624 = vmatprep.subr.bf16.mxu1 %v2891_v47  ;;  %v2807_v52 = vld [vmem:[%s4121_s1 + $0x150] ss:$8 sps:$4 sm:$0xff]   ;;  %v2894_v53 = vld [vmem:[%s4123_s3 + $0x8] sm:$0xff]  }
  0x12   :  { %2625 = vmatpush3.bf16.msra.mxu1 %v2892_v48  ;;  %v2812_v54 = vld [vmem:[%s4121_s1 + $0x164] ss:$8 sps:$4 sm:$0xff]   ;;  %v2895_v55 = vld [vmem:[%s4123_s3 + $0x50] sm:$0xff]   ;;  %v2897_v57 = vld [vmem:[%s4123_s3 + $0x58] sm:$0xff]  }
  0x13   :  { %673 = vmatpush1.bf16.msra.mxu0 %v2758_v9  ;;  %2626 = vmatprep.subr.bf16.mxu1 %v2893_v49  ;;  %v2896_v56 = vld [vmem:[%s4123_s3 + $0x10] sm:$0xff]   ;;  %v2810_v58 = vld [vmem:[%s4121_s1 + $0x160] ss:$8 sps:$4 sm:$0xff]   ;;  %v2898_v60 = vld [vmem:[%s4123_s3 + $0x18] sm:$0xff]  }
  0x14   :  { %674 = vmatprep.subr.bf16.mxu0 %v2759_v10  ;;  %v2815_v59 = vld [vmem:[%s4121_s1 + $0x174] ss:$8 sps:$4 sm:$0xff]   ;;  %v2899_v61 = vld [vmem:[%s4123_s3 + $0x60] sm:$0xff]   ;;  %v2813_v62 = vld [vmem:[%s4121_s1 + $0x170] ss:$8 sps:$4 sm:$0xff]  }
  0x15   :  { %v2818_v63 = vld [vmem:[%s4121_s1 + $0x184] ss:$8 sps:$4 sm:$0xff]   ;;  %v2816_v2 = vld [vmem:[%s4121_s1 + $0x180] ss:$8 sps:$4 sm:$0xff]   ;;  %v2821_v3 = vld [vmem:[%s4121_s1 + $0x194] ss:$8 sps:$4 sm:$0xff]  }
  0x16   :  { %2627 = vmatpush3.bf16.msra.mxu1 %v2894_v53  ;;  %v2900_v0 = vld [vmem:[%s4123_s3 + $0x20] sm:$0xff]   ;;  %v2901_v1 = vld [vmem:[%s4123_s3 + $0x68] sm:$0xff]   ;;  %v2819_v5 = vld [vmem:[%s4121_s1 + $0x190] ss:$8 sps:$4 sm:$0xff]  }
  0x17   :  { %675 = vmatpush1.bf16.msra.mxu0 %v2761_v11  ;;  %2628 = vmatprep.subr.bf16.mxu1 %v2895_v55  ;;  %v2902_v4 = vld [vmem:[%s4123_s3 + $0x28] sm:$0xff]   ;;  %v2827_v8 = vld [vmem:[%s4121_s1 + $0x1b4] ss:$8 sps:$4 sm:$0xff]   ;;  %v2825_v9 = vld [vmem:[%s4121_s1 + $0x1b0] ss:$8 sps:$4 sm:$0xff]  }
  0x18   :  { %676 = vmatprep.subr.bf16.mxu0 %v2762_v12  ;;  %v2824_v6 = vld [vmem:[%s4121_s1 + $0x1a4] ss:$8 sps:$4 sm:$0xff]   ;;  %v2822_v7 = vld [vmem:[%s4121_s1 + $0x1a0] ss:$8 sps:$4 sm:$0xff]   ;;  %v2833_v12 = vld [vmem:[%s4121_s1 + $0x1d4] ss:$8 sps:$4 sm:$0xff]  }
  0x19   :  { %v2830_v10 = vld [vmem:[%s4121_s1 + $0x1c4] ss:$8 sps:$4 sm:$0xff]   ;;  %v2828_v11 = vld [vmem:[%s4121_s1 + $0x1c0] ss:$8 sps:$4 sm:$0xff]   ;;  %v2831_v13 = vld [vmem:[%s4121_s1 + $0x1d0] ss:$8 sps:$4 sm:$0xff]  }
  0x1a   :  { %2629 = vmatpush3.bf16.msra.mxu1 %v2896_v56  ;;  %v2836_v14 = vld [vmem:[%s4121_s1 + $0x1e4] ss:$8 sps:$4 sm:$0xff]  }
  0x1b   :  { %677 = vmatpush1.bf16.msra.mxu0 %v2764_v15  ;;  %2630 = vmatprep.subr.bf16.mxu1 %v2897_v57  ;;  %v2834_v15 = vld [vmem:[%s4121_s1 + $0x1e0] ss:$8 sps:$4 sm:$0xff]  }
  0x1c   :  { %678 = vmatprep.subr.bf16.mxu0 %v2765_v16  ;;  %v2839_v16 = vld [vmem:[%s4121_s1 + $0x1f4] ss:$8 sps:$4 sm:$0xff]  }
  0x1e   :  { %2631 = vmatpush3.bf16.msra.mxu1 %v2898_v60 }
  0x1f   :  { %679 = vmatpush1.bf16.msra.mxu0 %v2767_v17  ;;  %2632 = vmatprep.subr.bf16.mxu1 %v2899_v61  ;;  %v2837_v17 = vld [vmem:[%s4121_s1 + $0x1f0] ss:$8 sps:$4 sm:$0xff]  }
  0x20   :  { %680 = vmatprep.subr.bf16.mxu0 %v2768_v18  ;;  %v48_v18 = vld [vmem:[%s4120_s0 + $0x10] sm:$0xff] }
  0x22   :  { %2633 = vmatpush3.bf16.msra.mxu1 %v2900_v0 }
  0x23   :  { %681 = vmatpush1.bf16.msra.mxu0 %v2770_v19  ;;  %2634 = vmatprep.subr.bf16.mxu1 %v2901_v1  ;;  %v2842_v19 = vld [vmem:[%s4121_s1 + $0x204] ss:$8 sps:$4 sm:$0xff]  }
  0x24   :  { %682 = vmatprep.subr.bf16.mxu0 %v2771_v20  ;;  %v51_v20 = vld [vmem:[%s4120_s0 + $0x28] sm:$0xff] }
  0x26   :  { %2635 = vmatpush3.bf16.msra.mxu1 %v2902_v4 }
  0x27   :  { %683 = vmatpush1.bf16.msra.mxu0 %v2773_v21  ;;  %v2840_v21 = vld [vmem:[%s4121_s1 + $0x200] ss:$8 sps:$4 sm:$0xff]  }
  0x28   :  { %684 = vmatprep.subr.bf16.mxu0 %v2774_v22  ;;  %v55_v22 = vpack.c.bf16 %v48_v18, %v48_v18 }
  0x2b   :  { %685 = vmatpush1.bf16.msra.mxu0 %v2776_v23  ;;  %v2845_v23 = vld [vmem:[%s4121_s1 + $0x214] ss:$8 sps:$4 sm:$0xff]  }
  0x2c   :  { %686 = vmatprep.subr.bf16.mxu0 %v2777_v24  ;;  %v58_v24 = vpack.c.bf16 %v51_v20, %v51_v20 }
  0x2f   :  { %687 = vmatpush1.bf16.msra.mxu0 %v2779_v25  ;;  %v2843_v25 = vld [vmem:[%s4121_s1 + $0x210] ss:$8 sps:$4 sm:$0xff]  }
  0x30   :  { %688 = vmatprep.subr.bf16.mxu0 %v2780_v26  ;;  %v2848_v26 = vld [vmem:[%s4121_s1 + $0x224] ss:$8 sps:$4 sm:$0xff]  }
  0x33   :  { %689 = vmatpush1.bf16.msra.mxu0 %v2782_v27  ;;  %v2846_v27 = vld [vmem:[%s4121_s1 + $0x220] ss:$8 sps:$4 sm:$0xff]  }
  0x34   :  { %690 = vmatprep.subr.bf16.mxu0 %v2783_v28  ;;  %v2851_v28 = vld [vmem:[%s4121_s1 + $0x234] ss:$8 sps:$4 sm:$0xff]  }
  0x37   :  { %691 = vmatpush1.bf16.msra.mxu0 %v2785_v29  ;;  %v2849_v29 = vld [vmem:[%s4121_s1 + $0x230] ss:$8 sps:$4 sm:$0xff]  }
  0x38   :  { %692 = vmatprep.subr.bf16.mxu0 %v2786_v30  ;;  %v2854_v30 = vld [vmem:[%s4121_s1 + $0x244] ss:$8 sps:$4 sm:$0xff]  }
  0x3b   :  { %693 = vmatpush1.bf16.msra.mxu0 %v2788_v31 }
  0x3c   :  { %694 = vmatprep.subr.bf16.mxu0 %v2789_v32 }
  0x3f   :  { %695 = vmatpush1.bf16.msra.mxu0 %v2791_v33 }
  0x40   :  { %705 = vmatprep.subr.bf16.mxu0 %v2794_v34 }
  0x42   :  { %697 = vmatmul.mubr.bf16.vlgmr.msra.gmra.mrb[0].mxu0 %v53_v37 }
  0x43   :  { %706 = vmatpush1.bf16.msra.mxu0 %v2792_v38  ;;  %737 = vmatprep.mubr.bf16.mxu0 %v56_v39 }
  0x44   :  { %707 = vmatprep.subr.bf16.mxu0 %v2797_v40 }
  0x47   :  { %708 = vmatpush1.bf16.msra.mxu0 %v2795_v41 }
  0x48   :  { %709 = vmatprep.subr.bf16.mxu0 %v2800_v42 }
  0x4b   :  { %710 = vmatpush1.bf16.msra.mxu0 %v2798_v43 }
  0x4c   :  { %711 = vmatprep.subr.bf16.mxu0 %v2803_v44 }
  0x4f   :  { %712 = vmatpush1.bf16.msra.mxu0 %v2801_v45 }
  0x50   :  { %713 = vmatprep.subr.bf16.mxu0 %v2806_v46 }
  0x53   :  { %714 = vmatpush1.bf16.msra.mxu0 %v2804_v50 }
  0x54   :  { %715 = vmatprep.subr.bf16.mxu0 %v2809_v51 }
  0x57   :  { %716 = vmatpush1.bf16.msra.mxu0 %v2807_v52 }
  0x58   :  { %717 = vmatprep.subr.bf16.mxu0 %v2812_v54 }
  0x5b   :  { %718 = vmatpush1.bf16.msra.mxu0 %v2810_v58 }
  0x5c   :  { %719 = vmatprep.subr.bf16.mxu0 %v2815_v59 }
  0x5f   :  { %720 = vmatpush1.bf16.msra.mxu0 %v2813_v62 }
  0x60   :  { %721 = vmatprep.subr.bf16.mxu0 %v2818_v63 }
  0x63   :  { %722 = vmatpush1.bf16.msra.mxu0 %v2816_v2 }
  0x64   :  { %723 = vmatprep.subr.bf16.mxu0 %v2821_v3 }
  0x67   :  { %724 = vmatpush1.bf16.msra.mxu0 %v2819_v5 }
  0x68   :  { %725 = vmatprep.subr.bf16.mxu0 %v2824_v6 }
  0x6b   :  { %726 = vmatpush1.bf16.msra.mxu0 %v2822_v7 }
  0x6c   :  { %727 = vmatprep.subr.bf16.mxu0 %v2827_v8 }
  0x6f   :  { %728 = vmatpush1.bf16.msra.mxu0 %v2825_v9 }
  0x70   :  { %729 = vmatprep.subr.bf16.mxu0 %v2830_v10 }
  0x73   :  { %730 = vmatpush1.bf16.msra.mxu0 %v2828_v11 }
  0x74   :  { %731 = vmatprep.subr.bf16.mxu0 %v2833_v12 }
  0x77   :  { %732 = vmatpush1.bf16.msra.mxu0 %v2831_v13 }
  0x78   :  { %733 = vmatprep.subr.bf16.mxu0 %v2836_v14 }
  0x7b   :  { %734 = vmatpush1.bf16.msra.mxu0 %v2834_v15 }
  0x7c   :  { %735 = vmatprep.subr.bf16.mxu0 %v2839_v16 }
  0x7f   :  { %736 = vmatpush1.bf16.msra.mxu0 %v2837_v17 }
  0x80   :  { %746 = vmatprep.subr.bf16.mxu0 %v2842_v19 }
  0x82   :  { %738 = vmatmul.mubr.bf16.vlgmr.msra.gmra.mrb[0].mxu0 %v55_v22 }
  0x83   :  { %747 = vmatpush1.bf16.msra.mxu0 %v2840_v21  ;;  %778 = vmatprep.mubr.bf16.mxu0 %v58_v24 }
  0x84   :  { %748 = vmatprep.subr.bf16.mxu0 %v2845_v23 }
  0x87   :  { %749 = vmatpush1.bf16.msra.mxu0 %v2843_v25 }
  0x88   :  { %750 = vmatprep.subr.bf16.mxu0 %v2848_v26 }
  0x8b   :  { %751 = vmatpush1.bf16.msra.mxu0 %v2846_v27 }
  0x8c   :  { %752 = vmatprep.subr.bf16.mxu0 %v2851_v28 }
  0x8d   :  { %18 = vsyncpa [#allocation3], 0  ;;  %v2852_v31 = vld [vmem:[%s4121_s1 + $0x240] ss:$8 sps:$4 sm:$0xff]   ;;  %v2857_v32 = vld [vmem:[%s4121_s1 + $0x254] ss:$8 sps:$4 sm:$0xff]   ;;  %v160_v2 = vlaneseq }
  0x8e   :  { %v2855_v33 = vld [vmem:[%s4121_s1 + $0x250] ss:$8 sps:$4 sm:$0xff]   ;;  %v2860_v34 = vld [vmem:[%s4121_s1 + $0x264] ss:$8 sps:$4 sm:$0xff]   ;;  %v2858_v35 = vld [vmem:[%s4121_s1 + $0x260] ss:$8 sps:$4 sm:$0xff]  }
  0x8f   :  { %753 = vmatpush1.bf16.msra.mxu0 %v2849_v29  ;;  %v2863_v36 = vld [vmem:[%s4121_s1 + $0x274] ss:$8 sps:$4 sm:$0xff]   ;;  %v2861_v37 = vld [vmem:[%s4121_s1 + $0x270] ss:$8 sps:$4 sm:$0xff]   ;;  %v2866_v38 = vld [vmem:[%s4121_s1 + $0x284] ss:$8 sps:$4 sm:$0xff]  }
  0x90   :  { %754 = vmatprep.subr.bf16.mxu0 %v2854_v30  ;;  %v2864_v39 = vld [vmem:[%s4121_s1 + $0x280] ss:$8 sps:$4 sm:$0xff]   ;;  %v2869_v40 = vld [vmem:[%s4121_s1 + $0x294] ss:$8 sps:$4 sm:$0xff]   ;;  %v2867_v41 = vld [vmem:[%s4121_s1 + $0x290] ss:$8 sps:$4 sm:$0xff]  }
  0x91   :  { %v2872_v42 = vld [vmem:[%s4121_s1 + $0x2a4] ss:$8 sps:$4 sm:$0xff]   ;;  %v2870_v43 = vld [vmem:[%s4121_s1 + $0x2a0] ss:$8 sps:$4 sm:$0xff]   ;;  %v2875_v44 = vld [vmem:[%s4121_s1 + $0x2b4] ss:$8 sps:$4 sm:$0xff]  }
  0x92   :  { %v2873_v45 = vld [vmem:[%s4121_s1 + $0x2b0] ss:$8 sps:$4 sm:$0xff]   ;;  %v2878_v46 = vld [vmem:[%s4121_s1 + $0x2c4] ss:$8 sps:$4 sm:$0xff]   ;;  %v2876_v47 = vld [vmem:[%s4121_s1 + $0x2c0] ss:$8 sps:$4 sm:$0xff]  }
  0x93   :  { %755 = vmatpush1.bf16.msra.mxu0 %v2852_v31  ;;  %v2881_v48 = vld [vmem:[%s4121_s1 + $0x2d4] ss:$8 sps:$4 sm:$0xff]   ;;  %v2879_v49 = vld [vmem:[%s4121_s1 + $0x2d0] ss:$8 sps:$4 sm:$0xff]   ;;  %v2884_v50 = vld [vmem:[%s4121_s1 + $0x2e4] ss:$8 sps:$4 sm:$0xff]  }
  0x94   :  { %756 = vmatprep.subr.bf16.mxu0 %v2857_v32  ;;  %v2882_v51 = vld [vmem:[%s4121_s1 + $0x2e0] ss:$8 sps:$4 sm:$0xff]   ;;  %v2887_v52 = vld [vmem:[%s4121_s1 + $0x2f4] ss:$8 sps:$4 sm:$0xff]   ;;  %v2885_v53 = vld [vmem:[%s4121_s1 + $0x2f0] ss:$8 sps:$4 sm:$0xff]  }
  0x95   :  { %v50_v54 = vld [vmem:[%s4120_s0 + $0x20] sm:$0xff]  ;;  %v3159_v58 = vmov 0   ;;  %v52_v59 = vld [vmem:[%s4120_s0 + $0x30] sm:$0xff]  ;;  %vm660_vm0 = vcmask 130048   ;;  %v2905_v63 = vld [vmem:[%s4123_s3 + $0x78] sm:$0xff]   ;;  %v3160_v1 = vmov 0.0  }
  0x96   :  { %v2890_v55 = vld [vmem:[%s4121_s1 + $0x304] ss:$8 sps:$4 sm:$0xff]   ;;  %v57_v56 = vpack.c.bf16 %v50_v54, %v50_v54  ;;  %v2888_v57 = vld [vmem:[%s4121_s1 + $0x300] ss:$8 sps:$4 sm:$0xff]   ;;  %v59_v60 = vpack.c.bf16 %v52_v59, %v52_v59  ;;  %v2903_v61 = vld [vmem:[%s4123_s3 + $0x70] sm:$0xff]   ;;  %v3599_v3 = vshrl.u32 %v160_v2, 7 }
  0x97   :  { %757 = vmatpush1.bf16.msra.mxu0 %v2855_v33  ;;  %v2904_v62 = vld [vmem:[%s4123_s3 + $0x30] sm:$0xff]   ;;  %2636 = vmatprep.subr.bf16.mxu1 %v2903_v61  ;;  %v2906_v0 = vld [vmem:[%s4123_s3 + $0x38] sm:$0xff]   ;;  %v158_v5 = vld [vmem:[%s4122_s2] sm:$0x3]  ;;  %vm3161_vm1 = vmmov 0  }
  0x98   :  { %758 = vmatprep.subr.bf16.mxu0 %v2860_v34  ;;  %2637 = vmatpush3.bf16.msra.mxu1 %v2904_v62  ;;  %v3602_v4 = vsub.s32 0, %v3599_v3  ;;  %v3608_v6 = vsub.s32 1, %v3599_v3  ;;  %v2907_v18 = vld [vmem:[%s4125_s5] sm:$0xff]   ;;  %v2908_v20 = vld [vmem:[%s4125_s5 + $0x8] sm:$0xff]   ;;  %v2909_v21 = vld [vmem:[%s4125_s5 + $0x10] sm:$0xff]  }
  0x99   :  { %2638 = vmatprep.subr.bf16.mxu1 %v2905_v63  ;;  %v2910_v22 = vld [vmem:[%s4125_s5 + $0x18] sm:$0xff]   ;;  %v2911_v23 = vld [vmem:[%s4125_s5 + $0x20] sm:$0xff]   ;;  %v2912_v24 = vld [vmem:[%s4125_s5 + $0x28] sm:$0xff]  }
  0x9a   :  { %v163_v7 = vrot.slane %v158_v5, %v3602_v4  ;;  %v167_v8 = vrot.slane %v158_v5, %v3608_v6  ;;  %v2913_v25 = vld [vmem:[%s4125_s5 + $0x30] sm:$0xff]   ;;  %v2914_v26 = vld [vmem:[%s4125_s5 + $0x38] sm:$0xff]   ;;  %v2454_v28 = vld [vmem:[%s4124_s4] ss:$0 sm:$0xff] }
  0x9b   :  { %759 = vmatpush1.bf16.msra.mxu0 %v2858_v35  ;;  %v2915_v35 = vld [vmem:[%s4127_s7] sm:$0xff]   ;;  %v2928_v54 = vld [vmem:[%s4129_s9 + $0x14] ss:$8 sps:$4 sm:$0xff]   ;;  %v2938_v63 = vld [vmem:[%s4129_s9 + $0x50] ss:$8 sps:$4 sm:$0xff]  }
  0x9c   :  { %760 = vmatprep.subr.bf16.mxu0 %v2863_v36  ;;  %2639 = vmatpush3.bf16.msra.mxu1 %v2906_v0  ;;  %v2934_v59 = vld [vmem:[%s4129_s9 + $0x34] ss:$8 sps:$4 sm:$0xff]   ;;  %v2935_v61 = vld [vmem:[%s4129_s9 + $0x40] ss:$8 sps:$4 sm:$0xff]   ;;  %v2943_v0 = vld [vmem:[%s4129_s9 + $0x64] ss:$8 sps:$4 sm:$0xff]  }
  0x9d   :  { %2686 = vmatprep.subr.bf16.mxu1 %v3160_v1  ;;  %v2940_v62 = vld [vmem:[%s4129_s9 + $0x54] ss:$8 sps:$4 sm:$0xff]   ;;  %v2944_v5 = vld [vmem:[%s4129_s9 + $0x70] ss:$8 sps:$4 sm:$0xff]  }
  0x9e   :  { %v2946_v2 = vld [vmem:[%s4129_s9 + $0x74] ss:$8 sps:$4 sm:$0xff]  }
  0x9f   :  { %761 = vmatpush1.bf16.msra.mxu0 %v2861_v37  ;;  %v2916_v37 = vld [vmem:[%s4127_s7 + $0x8] sm:$0xff]  }
  0xa0   :  { %762 = vmatprep.subr.bf16.mxu0 %v2866_v38  ;;  %v2917_v38 = vld [vmem:[%s4127_s7 + $0x10] sm:$0xff]  }
  0xa3   :  { %763 = vmatpush1.bf16.msra.mxu0 %v2864_v39  ;;  %v2918_v39 = vld [vmem:[%s4127_s7 + $0x18] sm:$0xff]  }
  0xa4   :  { %764 = vmatprep.subr.bf16.mxu0 %v2869_v40  ;;  %v2919_v40 = vld [vmem:[%s4127_s7 + $0x20] sm:$0xff]  }
  0xa7   :  { %765 = vmatpush1.bf16.msra.mxu0 %v2867_v41  ;;  %v2920_v41 = vld [vmem:[%s4127_s7 + $0x28] sm:$0xff]  }
  0xa8   :  { %766 = vmatprep.subr.bf16.mxu0 %v2872_v42  ;;  %v2921_v42 = vld [vmem:[%s4127_s7 + $0x30] sm:$0xff]  }
  0xab   :  { %767 = vmatpush1.bf16.msra.mxu0 %v2870_v43  ;;  %v2922_v43 = vld [vmem:[%s4127_s7 + $0x38] sm:$0xff]  }
  0xac   :  { %768 = vmatprep.subr.bf16.mxu0 %v2875_v44  ;;  %v2925_v44 = vld [vmem:[%s4129_s9 + $0x4] ss:$8 sps:$4 sm:$0xff]  }
  0xaf   :  { %769 = vmatpush1.bf16.msra.mxu0 %v2873_v45  ;;  %v2471_v45 = vld [vmem:[%s4126_s6] ss:$0 sm:$0xff] }
  0xb0   :  { %770 = vmatprep.subr.bf16.mxu0 %v2878_v46 }
  0xb3   :  { %771 = vmatpush1.bf16.msra.mxu0 %v2876_v47 }
  0xb4   :  { %772 = vmatprep.subr.bf16.mxu0 %v2881_v48 }
  0xb7   :  { %773 = vmatpush1.bf16.msra.mxu0 %v2879_v49 }
  0xb8   :  { %774 = vmatprep.subr.bf16.mxu0 %v2884_v50 }
  0xbb   :  { %775 = vmatpush1.bf16.msra.mxu0 %v2882_v51 }
  0xbc   :  { %776 = vmatprep.subr.bf16.mxu0 %v2887_v52  ;;  %v2923_v52 = vld [vmem:[%s4129_s9] ss:$8 sps:$4 sm:$0xff]  }
  0xbf   :  { %777 = vmatpush1.bf16.msra.mxu0 %v2885_v53 }
  0xc0   :  { %787 = vmatprep.subr.bf16.mxu0 %v2890_v55  ;;  %v2926_v55 = vld [vmem:[%s4129_s9 + $0x10] ss:$8 sps:$4 sm:$0xff]  }
  0xc2   :  { %779 = vmatmul.mubr.bf16.vlgmr.msra.gmra.mrb[0].mxu0 %v57_v56  ;;  %v2931_v56 = vld [vmem:[%s4129_s9 + $0x24] ss:$8 sps:$4 sm:$0xff]  }
  0xc3   :  { %788 = vmatpush1.bf16.msra.mxu0 %v2888_v57  ;;  %819 = vmatprep.mubr.bf16.mxu0 %v3159_v58  ;;  %v2929_v57 = vld [vmem:[%s4129_s9 + $0x20] ss:$8 sps:$4 sm:$0xff]  }
  0xce   :  { %2453 = vmatmul.mubr.msk.bf16.vlgmr.msra.gmra.mrb[0].mxu0 %vm660_vm0, %v59_v60  ;;  %v2937_v60 = vld [vmem:[%s4129_s9 + $0x44] ss:$8 sps:$4 sm:$0xff]  }
 0x1a1   :  { %v821_v9 = vpop.f32.mrb[0].mxu0 }
 0x1a2   :  { %v2726_v10 = vadd.f32 %v821_v9, %v163_v7  ;;  %v823_v11 = vpop.f32.mrb[1].mxu0  ;;  %v2949_v7 = vld [vmem:[%s4131_s11 + $0x4] ss:$28 sps:$4 sm:$0xff]   ;;  %v2952_v9 = vld [vmem:[%s4131_s11 + $0x14] ss:$28 sps:$4 sm:$0xff]  }
 0x1a3   :  { %v2727_v12 = vadd.f32 %v823_v11, %v167_v8  ;;  %v825_v13 = vpop.f32.mrb[2].mxu0  ;;  %v2950_v8 = vld [vmem:[%s4131_s11 + $0x10] ss:$28 sps:$4 sm:$0xff]   ;;  %2211 = vmatprep.subr.bf16.mxu0 %v2952_v9  ;;  %v3025_v9 = vld [vmem:[%s4131_s11 + $0x2d8] ss:$28 sps:$4 sm:$0xff]  }
 0x1a4   :  { %v828_v14 = vmax.f32 %v2726_v10, 0.0  ;;  %v826_v15 = vpop.f32.mrb[3].mxu0  ;;  %2212 = vmatpush1.bf16.msra.mxu0 %v2950_v8  ;;  %v2956_v10 = vld [vmem:[%s4131_s11 + $0x48] ss:$28 sps:$4 sm:$0xff]   ;;  %v3027_v8 = vld [vmem:[%s4131_s11 + $0x2dc] ss:$28 sps:$4 sm:$0xff]  }
 0x1a5   :  { %v829_v16 = vmax.f32 %v2727_v12, 0.0  ;;  %v2958_v11 = vld [vmem:[%s4131_s11 + $0x4c] ss:$28 sps:$4 sm:$0xff]   ;;  %v2962_v12 = vld [vmem:[%s4131_s11 + $0x80] ss:$28 sps:$4 sm:$0xff]  }
 0x1a6   :  { %v830_v19 = vpack.c.bf16 %v828_v14, %v828_v14  ;;  %2213 = vmatprep.subr.bf16.mxu0 %v2958_v11  ;;  %v2964_v13 = vld [vmem:[%s4131_s11 + $0x84] ss:$28 sps:$4 sm:$0xff]   ;;  %v2968_v14 = vld [vmem:[%s4131_s11 + $0xb8] ss:$28 sps:$4 sm:$0xff]   ;;  %v3031_v11 = vld [vmem:[%s4131_s11 + $0x310] ss:$28 sps:$4 sm:$0xff]  }
 0x1a7   :  { %v831_v17 = vpack.c.bf16 %v829_v16, %v829_v16  ;;  %v2970_v15 = vld [vmem:[%s4131_s11 + $0xbc] ss:$28 sps:$4 sm:$0xff]   ;;  %v2974_v16 = vld [vmem:[%s4131_s11 + $0xf0] ss:$28 sps:$4 sm:$0xff]  }
 0x1a8   :  { %2214 = vmatpush1.bf16.msra.mxu0 %v2956_v10  ;;  %v3033_v10 = vld [vmem:[%s4131_s11 + $0x314] ss:$28 sps:$4 sm:$0xff]  }
 0x1a9   :  { %999 = vmatprep.mubr.bf16.mxu1 %v831_v17  ;;  %2215 = vmatprep.subr.bf16.mxu0 %v2964_v13  ;;  %v2976_v17 = vld [vmem:[%s4131_s11 + $0xf4] ss:$28 sps:$4 sm:$0xff]   ;;  %v3034_v13 = vld [vmem:[%s4131_s11 + $0x320] ss:$28 sps:$4 sm:$0xff]  }
 0x1aa   :  { %1000 = vmatmul.mubr.bf16.vlgmr.msra.gmra.mrb[0].mxu1 %v830_v19  ;;  %v2982_v19 = vld [vmem:[%s4131_s11 + $0x12c] ss:$28 sps:$4 sm:$0xff]  }
 0x1ab   :  { %2687 = vmatpush3.bf16.msra.mxu1 %v2907_v18  ;;  %2702 = vmatprep.mubr.msk.bf16.mxu1 %vm3161_vm1, %v3160_v1  ;;  %v2980_v18 = vld [vmem:[%s4131_s11 + $0x128] ss:$28 sps:$4 sm:$0xff]  }
 0x1ac   :  { %2688 = vmatprep.subr.bf16.mxu1 %v3160_v1  ;;  %2216 = vmatpush1.bf16.msra.mxu0 %v2962_v12  ;;  %v3036_v12 = vld [vmem:[%s4131_s11 + $0x324] ss:$28 sps:$4 sm:$0xff]  }
 0x1ad   :  { %2217 = vmatprep.subr.bf16.mxu0 %v2970_v15  ;;  %v3037_v15 = vld [vmem:[%s4131_s11 + $0x348] ss:$28 sps:$4 sm:$0xff]  }
 0x1af   :  { %2689 = vmatpush3.bf16.msra.mxu1 %v2908_v20  ;;  %v2986_v20 = vld [vmem:[%s4131_s11 + $0x160] ss:$28 sps:$4 sm:$0xff]  }
 0x1b0   :  { %2690 = vmatprep.subr.bf16.mxu1 %v3160_v1  ;;  %2218 = vmatpush1.bf16.msra.mxu0 %v2968_v14  ;;  %v3039_v14 = vld [vmem:[%s4131_s11 + $0x34c] ss:$28 sps:$4 sm:$0xff]  }
 0x1b1   :  { %2219 = vmatprep.subr.bf16.mxu0 %v2976_v17  ;;  %v3040_v17 = vld [vmem:[%s4131_s11 + $0x358] ss:$28 sps:$4 sm:$0xff]  }
 0x1b3   :  { %2691 = vmatpush3.bf16.msra.mxu1 %v2909_v21  ;;  %v2988_v21 = vld [vmem:[%s4131_s11 + $0x164] ss:$28 sps:$4 sm:$0xff]  }
 0x1b4   :  { %2692 = vmatprep.subr.bf16.mxu1 %v3160_v1  ;;  %2220 = vmatpush1.bf16.msra.mxu0 %v2974_v16  ;;  %v3042_v16 = vld [vmem:[%s4131_s11 + $0x35c] ss:$28 sps:$4 sm:$0xff]  }
 0x1b5   :  { %2221 = vmatprep.subr.bf16.mxu0 %v2982_v19  ;;  %v1251_v19 = vld [vmem:[%s4130_s10] sm:$0x3] }
 0x1b7   :  { %2693 = vmatpush3.bf16.msra.mxu1 %v2910_v22  ;;  %v2992_v22 = vld [vmem:[%s4131_s11 + $0x198] ss:$28 sps:$4 sm:$0xff]  }
 0x1b8   :  { %2694 = vmatprep.subr.bf16.mxu1 %v3160_v1  ;;  %2222 = vmatpush1.bf16.msra.mxu0 %v2980_v18  ;;  %v3045_v18 = vld [vmem:[%s4131_s11 + $0xc] ss:$28 sps:$4 sm:$0xff]  }
 0x1b9   :  { %2223 = vmatprep.subr.bf16.mxu0 %v2988_v21  ;;  %v1260_v21 = vrot.slane %v1251_v19, %v3608_v6 }
 0x1bb   :  { %2695 = vmatpush3.bf16.msra.mxu1 %v2911_v23  ;;  %v2994_v23 = vld [vmem:[%s4131_s11 + $0x19c] ss:$28 sps:$4 sm:$0xff]  }
 0x1bc   :  { %2696 = vmatprep.subr.bf16.mxu1 %v3160_v1  ;;  %2224 = vmatpush1.bf16.msra.mxu0 %v2986_v20  ;;  %v1256_v20 = vrot.slane %v1251_v19, %v3602_v4  ;;  %v4092_v19 = vld [vmem:[%s4132_s12] sm:$0x7f] }
 0x1bd   :  { %2225 = vmatprep.subr.bf16.mxu0 %v2994_v23 }
 0x1bf   :  { %2697 = vmatpush3.bf16.msra.mxu1 %v2912_v24  ;;  %v2998_v24 = vld [vmem:[%s4131_s11 + $0x1d0] ss:$28 sps:$4 sm:$0xff]  }
 0x1c0   :  { %2698 = vmatprep.subr.bf16.mxu1 %v3160_v1  ;;  %2226 = vmatpush1.bf16.msra.mxu0 %v2992_v22 }
 0x1c3   :  { %2699 = vmatpush3.bf16.msra.mxu1 %v2913_v25  ;;  %v3000_v25 = vld [vmem:[%s4131_s11 + $0x1d4] ss:$28 sps:$4 sm:$0xff]  }
 0x1c4   :  { %2700 = vmatprep.subr.bf16.mxu1 %v3160_v1  ;;  %2227 = vmatprep.subr.bf16.mxu0 %v3000_v25 }
 0x1c5   :  { %2228 = vmatpush1.bf16.msra.mxu0 %v2998_v24 }
 0x1c7   :  { %2701 = vmatpush3.bf16.msra.mxu1 %v2914_v26  ;;  %v3004_v26 = vld [vmem:[%s4131_s11 + $0x208] ss:$28 sps:$4 sm:$0xff]  }
 0x1c8   :  { %2706 = vmatprep.subr.bf16.mxu1 %v3160_v1 }
 0x27d   :  { %v2640_v27 = vpop.f32.mrb[0].mxu1 }
 0x27e   :  { %v2641_v29 = vpop.f32.mrb[1].mxu1 }
 0x27f   :  { %v2642_v30 = vadd.f32 %v2641_v29, %v2640_v27  ;;  %v2643_v31 = vpop.f32.mrb[2].mxu1  ;;  %v3006_v27 = vld [vmem:[%s4131_s11 + $0x20c] ss:$28 sps:$4 sm:$0xff]   ;;  %v3012_v29 = vld [vmem:[%s4131_s11 + $0x244] ss:$28 sps:$4 sm:$0xff]  }
 0x280   :  { %v2644_v32 = vpop.f32.mrb[3].mxu1  ;;  %2229 = vmatprep.subr.bf16.mxu0 %v3006_v27  ;;  %v3018_v31 = vld [vmem:[%s4131_s11 + $0x27c] ss:$28 sps:$4 sm:$0xff]  }
 0x281   :  { %v1002_v33 = vadd.f32 %v2642_v30, %v2454_v28  ;;  %2230 = vmatpush1.bf16.msra.mxu0 %v3004_v26  ;;  %v3010_v28 = vld [vmem:[%s4131_s11 + $0x240] ss:$28 sps:$4 sm:$0xff]   ;;  %v3016_v30 = vld [vmem:[%s4131_s11 + $0x278] ss:$28 sps:$4 sm:$0xff]   ;;  %v3022_v32 = vld [vmem:[%s4131_s11 + $0x2b0] ss:$28 sps:$4 sm:$0xff]  }
 0x282   :  { %2231 = vmatprep.subr.bf16.mxu0 %v3012_v29 }
 0x283   :  { %v1007_v34 = vmax.f32 %v1002_v33, 0.0  ;;  %v3024_v33 = vld [vmem:[%s4131_s11 + $0x2b4] ss:$28 sps:$4 sm:$0xff]  }
 0x285   :  { %v1008_v36 = vpack.c.bf16 %v1007_v34, %v1007_v34  ;;  %2232 = vmatpush1.bf16.msra.mxu0 %v3010_v28  ;;  %v3028_v34 = vld [vmem:[%s4131_s11 + $0x2e8] ss:$28 sps:$4 sm:$0xff]  }
 0x286   :  { %2233 = vmatprep.subr.bf16.mxu0 %v3018_v31  ;;  %v3043_v31 = vld [vmem:[%s4131_s11 + $0x8] ss:$28 sps:$4 sm:$0xff]  }
 0x287   :  { %2703 = vmatmul.mubr.bf16.vlgmr.msra.gmra.mrb[4].mxu1 %v1008_v36  ;;  %v2480_v36 = vld [vmem:[%s4128_s8] ss:$0 sm:$0xff] }
 0x288   :  { %2707 = vmatpush3.bf16.msra.mxu1 %v2915_v35  ;;  %2722 = vmatprep.mubr.msk.bf16.mxu1 %vm3161_vm1, %v3160_v1  ;;  %v3030_v35 = vld [vmem:[%s4131_s11 + $0x2ec] ss:$28 sps:$4 sm:$0xff]  }
 0x289   :  { %2708 = vmatprep.subr.bf16.mxu1 %v3160_v1  ;;  %2234 = vmatpush1.bf16.msra.mxu0 %v3016_v30 }
 0x28a   :  { %2235 = vmatprep.subr.bf16.mxu0 %v3024_v33  ;;  %v3048_v33 = vld [vmem:[%s4131_s11 + $0x44] ss:$28 sps:$4 sm:$0xff]  }
 0x28c   :  { %2709 = vmatpush3.bf16.msra.mxu1 %v2916_v37 }
 0x28d   :  { %2710 = vmatprep.subr.bf16.mxu1 %v3160_v1  ;;  %2236 = vmatpush1.bf16.msra.mxu0 %v3022_v32 }
 0x28e   :  { %2237 = vmatprep.subr.bf16.mxu0 %v3030_v35  ;;  %v3051_v35 = vld [vmem:[%s4131_s11 + $0x7c] ss:$28 sps:$4 sm:$0xff]  }
 0x290   :  { %2711 = vmatpush3.bf16.msra.mxu1 %v2917_v38 }
 0x291   :  { %2712 = vmatprep.subr.bf16.mxu1 %v3160_v1  ;;  %2238 = vmatpush1.bf16.msra.mxu0 %v3028_v34  ;;  %v3046_v34 = vld [vmem:[%s4131_s11 + $0x40] ss:$28 sps:$4 sm:$0xff]  }
 0x292   :  { %2239 = vmatprep.subr.bf16.mxu0 %v3036_v12  ;;  %v3101_v12 = vld [vmem:[%s4131_s11 + $0x2f0] ss:$28 sps:$4 sm:$0xff]  }
 0x294   :  { %2713 = vmatpush3.bf16.msra.mxu1 %v2918_v39 }
 0x295   :  { %2714 = vmatprep.subr.bf16.mxu1 %v3160_v1  ;;  %2240 = vmatpush1.bf16.msra.mxu0 %v3034_v13  ;;  %v3102_v13 = vld [vmem:[%s4131_s11 + $0x130] ss:$28 sps:$4 sm:$0xff]  }
 0x296   :  { %2241 = vmatprep.subr.bf16.mxu0 %v3042_v16  ;;  %v3105_v16 = vld [vmem:[%s4131_s11 + $0x360] ss:$28 sps:$4 sm:$0xff]  }
 0x298   :  { %2715 = vmatpush3.bf16.msra.mxu1 %v2919_v40 }
 0x299   :  { %2716 = vmatprep.subr.bf16.mxu1 %v3160_v1  ;;  %2242 = vmatpush1.bf16.msra.mxu0 %v3040_v17  ;;  %v3106_v17 = vld [vmem:[%s4131_s11 + $0x1a0] ss:$28 sps:$4 sm:$0xff]  }
 0x29c   :  { %2717 = vmatpush3.bf16.msra.mxu1 %v2920_v41 }
 0x29d   :  { %2718 = vmatprep.subr.bf16.mxu1 %v3160_v1 }
 0x2a0   :  { %2719 = vmatpush3.bf16.msra.mxu1 %v2921_v42 }
 0x2a1   :  { %2720 = vmatprep.subr.bf16.mxu1 %v3160_v1  ;;  %v2941_v1 = vld [vmem:[%s4129_s9 + $0x60] ss:$8 sps:$4 sm:$0xff]  }
 0x2a4   :  { %2721 = vmatpush3.bf16.msra.mxu1 %v2922_v43  ;;  %v2947_v43 = vld [vmem:[%s4131_s11] ss:$28 sps:$4 sm:$0xff]  }
 0x2a5   :  { %1343 = vmatprep.subr.bf16.mxu1 %v2925_v44 }
 0x35a   :  { %v1114_v46 = vpop.f32.mrb[4].mxu1 }
 0x35b   :  { %v1115_v47 = vadd.f32 %v2471_v45, %v1114_v46  ;;  %v2704_v48 = vpop.f32.mrb[5].mxu1  ;;  %v2955_v45 = vld [vmem:[%s4131_s11 + $0x3c] ss:$28 sps:$4 sm:$0xff]  }
 0x35c   :  { %v1117_v49 = vpop.f32.mrb[6].mxu1  ;;  %v2953_v46 = vld [vmem:[%s4131_s11 + $0x38] ss:$28 sps:$4 sm:$0xff]   ;;  %v2959_v48 = vld [vmem:[%s4131_s11 + $0x70] ss:$28 sps:$4 sm:$0xff]  }
 0x35d   :  { %v1120_v50 = vmax.f32 %v1115_v47, 0.0  ;;  %v2705_v51 = vpop.f32.mrb[7].mxu1  ;;  %v2961_v47 = vld [vmem:[%s4131_s11 + $0x74] ss:$28 sps:$4 sm:$0xff]   ;;  %v2967_v49 = vld [vmem:[%s4131_s11 + $0xac] ss:$28 sps:$4 sm:$0xff]  }
 0x35e   :  { %v2973_v51 = vld [vmem:[%s4131_s11 + $0xe4] ss:$28 sps:$4 sm:$0xff]  }
 0x35f   :  { %v1121_v53 = vpack.c.bf16 %v1120_v50, %v1120_v50  ;;  %v2965_v50 = vld [vmem:[%s4131_s11 + $0xa8] ss:$28 sps:$4 sm:$0xff]  }
 0x361   :  { %2723 = vmatmul.mubr.bf16.vlgmr.msra.gmra.mrb[8].mxu1 %v1121_v53  ;;  %v2979_v53 = vld [vmem:[%s4131_s11 + $0x11c] ss:$28 sps:$4 sm:$0xff]  }
 0x362   :  { %1344 = vmatpush1.bf16.msra.mxu1 %v2923_v52  ;;  %1375 = vmatprep.mubr.bf16.mxu1 %v3159_v58  ;;  %v2932_v58 = vld [vmem:[%s4129_s9 + $0x30] ss:$8 sps:$4 sm:$0xff]   ;;  %v2971_v52 = vld [vmem:[%s4131_s11 + $0xe0] ss:$28 sps:$4 sm:$0xff]  }
 0x363   :  { %1345 = vmatprep.subr.bf16.mxu1 %v2928_v54  ;;  %v2977_v54 = vld [vmem:[%s4131_s11 + $0x118] ss:$28 sps:$4 sm:$0xff]  }
 0x366   :  { %1346 = vmatpush1.bf16.msra.mxu1 %v2926_v55  ;;  %v2985_v55 = vld [vmem:[%s4131_s11 + $0x154] ss:$28 sps:$4 sm:$0xff]  }
 0x367   :  { %1347 = vmatprep.subr.bf16.mxu1 %v2931_v56  ;;  %v2983_v56 = vld [vmem:[%s4131_s11 + $0x150] ss:$28 sps:$4 sm:$0xff]  }
 0x36a   :  { %1348 = vmatpush1.bf16.msra.mxu1 %v2929_v57  ;;  %v2991_v57 = vld [vmem:[%s4131_s11 + $0x18c] ss:$28 sps:$4 sm:$0xff]  }
 0x36b   :  { %1349 = vmatprep.subr.bf16.mxu1 %v2934_v59  ;;  %v2989_v59 = vld [vmem:[%s4131_s11 + $0x188] ss:$28 sps:$4 sm:$0xff]  }
 0x36e   :  { %1350 = vmatpush1.bf16.msra.mxu1 %v2932_v58  ;;  %v2997_v58 = vld [vmem:[%s4131_s11 + $0x1c4] ss:$28 sps:$4 sm:$0xff]  }
 0x36f   :  { %1351 = vmatprep.subr.bf16.mxu1 %v2937_v60  ;;  %v2995_v60 = vld [vmem:[%s4131_s11 + $0x1c0] ss:$28 sps:$4 sm:$0xff]  }
 0x372   :  { %1352 = vmatpush1.bf16.msra.mxu1 %v2935_v61  ;;  %v3003_v61 = vld [vmem:[%s4131_s11 + $0x1fc] ss:$28 sps:$4 sm:$0xff]  }
 0x373   :  { %1353 = vmatprep.subr.bf16.mxu1 %v2940_v62  ;;  %v3001_v62 = vld [vmem:[%s4131_s11 + $0x1f8] ss:$28 sps:$4 sm:$0xff]  }
 0x376   :  { %1354 = vmatpush1.bf16.msra.mxu1 %v2938_v63  ;;  %v3009_v63 = vld [vmem:[%s4131_s11 + $0x234] ss:$28 sps:$4 sm:$0xff]  }
 0x377   :  { %1355 = vmatprep.subr.bf16.mxu1 %v2943_v0  ;;  %v3007_v0 = vld [vmem:[%s4131_s11 + $0x230] ss:$28 sps:$4 sm:$0xff]  }
 0x37a   :  { %1356 = vmatpush1.bf16.msra.mxu1 %v2941_v1  ;;  %v3015_v1 = vld [vmem:[%s4131_s11 + $0x26c] ss:$28 sps:$4 sm:$0xff]  }
 0x37b   :  { %1357 = vmatprep.subr.bf16.mxu1 %v2946_v2  ;;  %v3013_v2 = vld [vmem:[%s4131_s11 + $0x268] ss:$28 sps:$4 sm:$0xff]  }
 0x37e   :  { %1358 = vmatpush1.bf16.msra.mxu1 %v2944_v5  ;;  %v3021_v5 = vld [vmem:[%s4131_s11 + $0x2a4] ss:$28 sps:$4 sm:$0xff]  }
 0x37f   :  { %2129 = vmatprep.subr.bf16.mxu1 %v2949_v7  ;;  %v3019_v7 = vld [vmem:[%s4131_s11 + $0x2a0] ss:$28 sps:$4 sm:$0xff]  }
 0x434   :  { %v1227_v37 = vpop.f32.mrb[8].mxu1 }
 0x435   :  { %v1228_v38 = vadd.f32 %v2480_v36, %v1227_v37  ;;  %v2724_v39 = vpop.f32.mrb[9].mxu1  ;;  %v3049_v36 = vld [vmem:[%s4131_s11 + $0x78] ss:$28 sps:$4 sm:$0xff]  }
 0x436   :  { %v1230_v40 = vpop.f32.mrb[10].mxu1  ;;  %v3054_v37 = vld [vmem:[%s4131_s11 + $0xb4] ss:$28 sps:$4 sm:$0xff]   ;;  %v3057_v39 = vld [vmem:[%s4131_s11 + $0xec] ss:$28 sps:$4 sm:$0xff]  }
 0x437   :  { %v1233_v41 = vmax.f32 %v1228_v38, 0.0  ;;  %v2725_v42 = vpop.f32.mrb[11].mxu1  ;;  %v3052_v38 = vld [vmem:[%s4131_s11 + $0xb0] ss:$28 sps:$4 sm:$0xff]   ;;  %v3055_v40 = vld [vmem:[%s4131_s11 + $0xe8] ss:$28 sps:$4 sm:$0xff]  }
 0x438   :  { %v3058_v42 = vld [vmem:[%s4131_s11 + $0x120] ss:$28 sps:$4 sm:$0xff]  }
 0x439   :  { %v1234_v44 = vpack.c.bf16 %v1233_v41, %v1233_v41  ;;  %v3060_v41 = vld [vmem:[%s4131_s11 + $0x124] ss:$28 sps:$4 sm:$0xff]  }
 0x43b   :  { %1376 = vmatmul.mubr.bf16.vlgmr.msra.gmra.mrb[12].mxu1 %v1234_v44  ;;  %v3061_v44 = vld [vmem:[%s4131_s11 + $0x158] ss:$28 sps:$4 sm:$0xff]  }
 0x43c   :  { %2130 = vmatpush1.bf16.msra.mxu1 %v2947_v43  ;;  %v3063_v43 = vld [vmem:[%s4131_s11 + $0x15c] ss:$28 sps:$4 sm:$0xff]  }
 0x43d   :  { %2131 = vmatprep.subr.bf16.mxu1 %v2955_v45  ;;  %v3066_v45 = vld [vmem:[%s4131_s11 + $0x194] ss:$28 sps:$4 sm:$0xff]  }
 0x440   :  { %2132 = vmatpush1.bf16.msra.mxu1 %v2953_v46  ;;  %v3064_v46 = vld [vmem:[%s4131_s11 + $0x190] ss:$28 sps:$4 sm:$0xff]  }
 0x441   :  { %2133 = vmatprep.subr.bf16.mxu1 %v2961_v47  ;;  %v3069_v47 = vld [vmem:[%s4131_s11 + $0x1cc] ss:$28 sps:$4 sm:$0xff]  }
 0x444   :  { %2134 = vmatpush1.bf16.msra.mxu1 %v2959_v48  ;;  %v3067_v48 = vld [vmem:[%s4131_s11 + $0x1c8] ss:$28 sps:$4 sm:$0xff]  }
 0x445   :  { %2135 = vmatprep.subr.bf16.mxu1 %v2967_v49  ;;  %v3072_v49 = vld [vmem:[%s4131_s11 + $0x204] ss:$28 sps:$4 sm:$0xff]  }
 0x448   :  { %2136 = vmatpush1.bf16.msra.mxu1 %v2965_v50  ;;  %v3070_v50 = vld [vmem:[%s4131_s11 + $0x200] ss:$28 sps:$4 sm:$0xff]  }
 0x449   :  { %2137 = vmatprep.subr.bf16.mxu1 %v2973_v51  ;;  %v3075_v51 = vld [vmem:[%s4131_s11 + $0x23c] ss:$28 sps:$4 sm:$0xff]  }
 0x44c   :  { %2138 = vmatpush1.bf16.msra.mxu1 %v2971_v52  ;;  %v3073_v52 = vld [vmem:[%s4131_s11 + $0x238] ss:$28 sps:$4 sm:$0xff]  }
 0x44d   :  { %2139 = vmatprep.subr.bf16.mxu1 %v2979_v53  ;;  %v3078_v53 = vld [vmem:[%s4131_s11 + $0x274] ss:$28 sps:$4 sm:$0xff]  }
 0x450   :  { %2140 = vmatpush1.bf16.msra.mxu1 %v2977_v54  ;;  %v3076_v54 = vld [vmem:[%s4131_s11 + $0x270] ss:$28 sps:$4 sm:$0xff]  }
 0x451   :  { %2141 = vmatprep.subr.bf16.mxu1 %v2985_v55  ;;  %v3081_v55 = vld [vmem:[%s4131_s11 + $0x2ac] ss:$28 sps:$4 sm:$0xff]  }
 0x454   :  { %2142 = vmatpush1.bf16.msra.mxu1 %v2983_v56  ;;  %v3079_v56 = vld [vmem:[%s4131_s11 + $0x2a8] ss:$28 sps:$4 sm:$0xff]  }
 0x455   :  { %2143 = vmatprep.subr.bf16.mxu1 %v2991_v57  ;;  %v3084_v57 = vld [vmem:[%s4131_s11 + $0x2e4] ss:$28 sps:$4 sm:$0xff]  }
 0x458   :  { %2144 = vmatpush1.bf16.msra.mxu1 %v2989_v59  ;;  %v3082_v59 = vld [vmem:[%s4131_s11 + $0x2e0] ss:$28 sps:$4 sm:$0xff]  }
 0x459   :  { %2145 = vmatprep.subr.bf16.mxu1 %v2997_v58  ;;  %v3087_v58 = vld [vmem:[%s4131_s11 + $0x31c] ss:$28 sps:$4 sm:$0xff]  }
 0x45c   :  { %2146 = vmatpush1.bf16.msra.mxu1 %v2995_v60  ;;  %v3085_v60 = vld [vmem:[%s4131_s11 + $0x318] ss:$28 sps:$4 sm:$0xff]  }
 0x45d   :  { %2147 = vmatprep.subr.bf16.mxu1 %v3003_v61  ;;  %v3090_v61 = vld [vmem:[%s4131_s11 + $0x354] ss:$28 sps:$4 sm:$0xff]  }
 0x460   :  { %2148 = vmatpush1.bf16.msra.mxu1 %v3001_v62  ;;  %v3088_v62 = vld [vmem:[%s4131_s11 + $0x350] ss:$28 sps:$4 sm:$0xff]  }
 0x461   :  { %2149 = vmatprep.subr.bf16.mxu1 %v3009_v63  ;;  %v3091_v63 = vld [vmem:[%s4131_s11 + $0x1d8] ss:$28 sps:$4 sm:$0xff]  }
 0x464   :  { %2150 = vmatpush1.bf16.msra.mxu1 %v3007_v0  ;;  %v3092_v0 = vld [vmem:[%s4131_s11 + $0x18] ss:$28 sps:$4 sm:$0xff]  }
 0x465   :  { %2151 = vmatprep.subr.bf16.mxu1 %v3015_v1  ;;  %v3093_v1 = vld [vmem:[%s4131_s11 + $0x210] ss:$28 sps:$4 sm:$0xff]  }
 0x468   :  { %2152 = vmatpush1.bf16.msra.mxu1 %v3013_v2  ;;  %v3094_v2 = vld [vmem:[%s4131_s11 + $0x50] ss:$28 sps:$4 sm:$0xff]  }
 0x469   :  { %2153 = vmatprep.subr.bf16.mxu1 %v3021_v5  ;;  %v3095_v5 = vld [vmem:[%s4131_s11 + $0x248] ss:$28 sps:$4 sm:$0xff]  }
 0x46c   :  { %2154 = vmatpush1.bf16.msra.mxu1 %v3019_v7  ;;  %v3096_v7 = vld [vmem:[%s4131_s11 + $0x88] ss:$28 sps:$4 sm:$0xff]  }
 0x46d   :  { %2155 = vmatprep.subr.bf16.mxu1 %v3027_v8  ;;  %v3097_v8 = vld [vmem:[%s4131_s11 + $0x280] ss:$28 sps:$4 sm:$0xff]  }
 0x470   :  { %2156 = vmatpush1.bf16.msra.mxu1 %v3025_v9  ;;  %v3098_v9 = vld [vmem:[%s4131_s11 + $0xc0] ss:$28 sps:$4 sm:$0xff]  }
 0x471   :  { %2157 = vmatprep.subr.bf16.mxu1 %v3033_v10  ;;  %v3099_v10 = vld [vmem:[%s4131_s11 + $0x2b8] ss:$28 sps:$4 sm:$0xff]  }
 0x474   :  { %2158 = vmatpush1.bf16.msra.mxu1 %v3031_v11  ;;  %v3100_v11 = vld [vmem:[%s4131_s11 + $0xf8] ss:$28 sps:$4 sm:$0xff]  }
 0x475   :  { %2159 = vmatprep.subr.bf16.mxu1 %v3039_v14  ;;  %v3103_v14 = vld [vmem:[%s4131_s11 + $0x328] ss:$28 sps:$4 sm:$0xff]  }
 0x478   :  { %2160 = vmatpush1.bf16.msra.mxu1 %v3037_v15  ;;  %v3104_v15 = vld [vmem:[%s4131_s11 + $0x168] ss:$28 sps:$4 sm:$0xff]   ;;  %s3162_s11 = smov [#allocation2]  }
 0x479   :  { %2170 = vmatprep.subr.bf16.mxu1 %v3045_v18  ;;  %v1536_v18 = vsub.s32 4, %v3599_v3  ;;  %s2347_s12 = sshll.u32 %s3162_s11, 4  ;;  %s2348_s12 = int_to_ptr.vmem [resolvable:$true] %s2347_s12 }
 0x47a   :  { %s3135_s16 = scalar_lea.vmem %s2348_s12, 896  ;;  %p3140_p1 = scmp.lt.s32.totalorder %s2348_s12, %s2348_s12 }
 0x47b   :  { %p3136_p0 = scmp.ne.s32.totalorder %s2348_s12, %s3135_s16  ;;  %p3141_p2 = scmp.lt.s32.totalorder %s3135_s16, %s3135_s16 }
 0x47d   :  { %p3142_p3 = por %p3141_p2, %p3140_p1 }
 0x47f   :  { %p3143_p4 = pnand %p3142_p3, %p3136_p0 }
 0x50e   :  { %v1377_v22 = vpop.f32.mrb[12].mxu1 }
 0x50f   :  { %v1378_v23 = vadd.f32 %v1377_v22, %v1256_v20  ;;  %v1379_v24 = vpop.f32.mrb[13].mxu1  ;;  %v1540_v20 = vsub.s32 5, %v3599_v3  ;;  %v1537_v22 = vrot.slane %v4092_v19, %v1536_v18 }
 0x510   :  { %v1380_v25 = vadd.f32 %v1379_v24, %v1260_v21  ;;  %v1381_v26 = vpop.f32.mrb[14].mxu1  ;;  %v1521_v21 = vrot.slane %v4092_v19, %v3602_v4 }
 0x511   :  { %v1384_v27 = vmax.f32 %v1378_v23, 0.0  ;;  %v1382_v28 = vpop.f32.mrb[15].mxu1  ;;  %v1525_v23 = vrot.slane %v4092_v19, %v3608_v6  ;;  %v1541_v24 = vrot.slane %v4092_v19, %v1540_v20 }
 0x512   :  { %v1385_v29 = vmax.f32 %v1380_v25, 0.0 }
 0x513   :  { %v3940_v32 = vpack.c.bf16 %v1384_v27, %v1384_v27 }
 0x514   :  { %v3935_v30 = vpack.c.bf16 %v1385_v29, %v1385_v29 }
 0x516   :  { %2161 = vmatprep.mubr.bf16.mxu1 %v3935_v30  ;;  %2243 = vmatprep.mubr.bf16.mxu0 %v3935_v30 }
 0x517   :  { %2162 = vmatmul.mubr.bf16.vlgmr.msra.gmra.mrb[16].mxu1 %v3940_v32  ;;  %2244 = vmatmul.mubr.bf16.vlgmr.msra.gmra.mrb[4].mxu0 %v3940_v32 }
 0x518   :  { %2171 = vmatpush1.bf16.msra.mxu1 %v3043_v31  ;;  %2202 = vmatprep.mubr.bf16.mxu1 %v3935_v30 }
 0x519   :  { %2172 = vmatprep.subr.bf16.mxu1 %v3048_v33 }
 0x51c   :  { %2173 = vmatpush1.bf16.msra.mxu1 %v3046_v34 }
 0x51d   :  { %2174 = vmatprep.subr.bf16.mxu1 %v3051_v35 }
 0x520   :  { %2175 = vmatpush1.bf16.msra.mxu1 %v3049_v36 }
 0x521   :  { %2176 = vmatprep.subr.bf16.mxu1 %v3054_v37 }
 0x524   :  { %2177 = vmatpush1.bf16.msra.mxu1 %v3052_v38 }
 0x525   :  { %2178 = vmatprep.subr.bf16.mxu1 %v3057_v39 }
 0x528   :  { %2179 = vmatpush1.bf16.msra.mxu1 %v3055_v40 }
 0x529   :  { %2180 = vmatprep.subr.bf16.mxu1 %v3060_v41 }
 0x52c   :  { %2181 = vmatpush1.bf16.msra.mxu1 %v3058_v42 }
 0x52d   :  { %2182 = vmatprep.subr.bf16.mxu1 %v3063_v43 }
 0x530   :  { %2183 = vmatpush1.bf16.msra.mxu1 %v3061_v44 }
 0x531   :  { %2184 = vmatprep.subr.bf16.mxu1 %v3066_v45 }
 0x534   :  { %2185 = vmatpush1.bf16.msra.mxu1 %v3064_v46 }
 0x535   :  { %2186 = vmatprep.subr.bf16.mxu1 %v3069_v47 }
 0x538   :  { %2187 = vmatpush1.bf16.msra.mxu1 %v3067_v48 }
 0x539   :  { %2188 = vmatprep.subr.bf16.mxu1 %v3072_v49 }
 0x53c   :  { %2189 = vmatpush1.bf16.msra.mxu1 %v3070_v50 }
 0x53d   :  { %2190 = vmatprep.subr.bf16.mxu1 %v3075_v51  ;;  %v1528_v51 = vsub.s32 2, %v3599_v3 }
 0x540   :  { %2191 = vmatpush1.bf16.msra.mxu1 %v3073_v52  ;;  %v1532_v52 = vsub.s32 3, %v3599_v3 }
 0x541   :  { %2192 = vmatprep.subr.bf16.mxu1 %v3078_v53  ;;  %v1529_v53 = vrot.slane %v4092_v19, %v1528_v51 }
 0x544   :  { %2193 = vmatpush1.bf16.msra.mxu1 %v3076_v54  ;;  %v1533_v54 = vrot.slane %v4092_v19, %v1532_v52 }
 0x545   :  { %2194 = vmatprep.subr.bf16.mxu1 %v3081_v55 }
 0x548   :  { %2195 = vmatpush1.bf16.msra.mxu1 %v3079_v56 }
 0x549   :  { %2196 = vmatprep.subr.bf16.mxu1 %v3084_v57 }
 0x54c   :  { %2197 = vmatpush1.bf16.msra.mxu1 %v3082_v59 }
 0x54d   :  { %2198 = vmatprep.subr.bf16.mxu1 %v3087_v58 }
 0x550   :  { %2199 = vmatpush1.bf16.msra.mxu1 %v3085_v60 }
 0x551   :  { %2200 = vmatprep.subr.bf16.mxu1 %v3090_v61 }
 0x554   :  { %2201 = vmatpush1.bf16.msra.mxu1 %v3088_v62 }
 0x555   :  { %2664 = vmatprep.subr.bf16.mxu1 %v3091_v63 }
 0x557   :  { %2203 = vmatmul.mubr.bf16.vlgmr.msra.gmra.mrb[20].mxu1 %v3940_v32 }
 0x558   :  { %2665 = vmatpush3.bf16.msra.mxu1 %v3092_v0  ;;  %2284 = vmatprep.mubr.bf16.mxu1 %v3935_v30 }
 0x559   :  { %2666 = vmatprep.subr.bf16.mxu1 %v3093_v1 }
 0x55c   :  { %2667 = vmatpush3.bf16.msra.mxu1 %v3094_v2 }
 0x55d   :  { %2668 = vmatprep.subr.bf16.mxu1 %v3095_v5 }
 0x560   :  { %2669 = vmatpush3.bf16.msra.mxu1 %v3096_v7  ;;  %v1544_v7 = vsub.s32 6, %v3599_v3 }
 0x561   :  { %2670 = vmatprep.subr.bf16.mxu1 %v3097_v8 }
 0x564   :  { %2671 = vmatpush3.bf16.msra.mxu1 %v3098_v9 }
 0x565   :  { %2672 = vmatprep.subr.bf16.mxu1 %v3099_v10  ;;  %v1545_v10 = vrot.slane %v4092_v19, %v1544_v7 }
 0x568   :  { %2673 = vmatpush3.bf16.msra.mxu1 %v3100_v11 }
 0x569   :  { %2674 = vmatprep.subr.bf16.mxu1 %v3101_v12 }
 0x56c   :  { %2675 = vmatpush3.bf16.msra.mxu1 %v3102_v13 }
 0x56d   :  { %2676 = vmatprep.subr.bf16.mxu1 %v3103_v14 }
 0x570   :  { %2677 = vmatpush3.bf16.msra.mxu1 %v3104_v15 }
 0x571   :  { %2678 = vmatprep.subr.bf16.mxu1 %v3105_v16 }
 0x574   :  { %2679 = vmatpush3.bf16.msra.mxu1 %v3106_v17 }
 0x577   :  { %2285 = vmatmul.mubr.bf16.vlgmr.msra.gmra.mrb[24].mxu1 %v3940_v32 }
 0x5ea   :  { %v2163_v25 = vpop.f32.mrb[16].mxu1  ;;  %v2245_v26 = vpop.f32.mrb[4].mxu0 }
 0x5eb   :  { %v2164_v27 = vadd.f32 %v2163_v25, %v1521_v21  ;;  %v2246_v28 = vadd.f32 %v2245_v26, %v1537_v22  ;;  %v2165_v29 = vpop.f32.mrb[17].mxu1  ;;  %v2247_v30 = vpop.f32.mrb[5].mxu0 }
 0x5ec   :  { %v2166_v31 = vadd.f32 %v2165_v29, %v1525_v23  ;;  %v2248_v32 = vadd.f32 %v2247_v30, %v1541_v24  ;;  %v2167_v33 = vpop.f32.mrb[18].mxu1  ;;  %v2249_v34 = vpop.f32.mrb[6].mxu0 }
 0x5ed   :  { %v2617_v35 = vmul.f32 -1.442695, %v2164_v27  ;;  %v2621_v36 = vmul.f32 -1.442695, %v2246_v28  ;;  %v2168_v4 = vpop.f32.mrb[19].mxu1  ;;  %v2250_v37 = vpop.f32.mrb[7].mxu0 }
 0x5ee   :  { %v2618_v38 = vmul.f32 -1.442695, %v2166_v31  ;;  %v2622_v39 = vmul.f32 -1.442695, %v2248_v32 }
 0x5ef   :  { %3107 = vpow2.f32 %v2617_v35 }
 0x5f0   :  { %3109 = vpow2.f32 %v2621_v36 }
 0x5f1   :  { %3111 = vpow2.f32 %v2618_v38 }
 0x5f2   :  { %3113 = vpow2.f32 %v2622_v39 }
 0x5f9   :  { %v3108_v6 = vpop.eup %3107 }
 0x5fa   :  { %v3110_v40 = vpop.eup %3109  ;;  %v2313_v41 = vadd.f32 1.0, %v3108_v6 }
 0x5fb   :  { %v3112_v42 = vpop.eup %3111  ;;  %v2317_v43 = vadd.f32 1.0, %v3110_v40 }
 0x5fc   :  { %v3114_v44 = vpop.eup %3113  ;;  %3115 = vrcp.f32 %v2313_v41  ;;  %v2314_v45 = vadd.f32 1.0, %v3112_v42 }
 0x5fd   :  { %3117 = vrcp.f32 %v2317_v43  ;;  %v2318_v46 = vadd.f32 1.0, %v3114_v44 }
 0x5fe   :  { %3119 = vrcp.f32 %v2314_v45 }
 0x5ff   :  { %3121 = vrcp.f32 %v2318_v46 }
 0x606   :  { %v3116_v47 = vpop.eup %3115 }
 0x607   :  { %v3118_v48 = vpop.eup %3117  ;;  %2334 = vst [vmem:[#allocation2] sm:$0xff] %v3116_v47 }
 0x608   :  { %v3120_v49 = vpop.eup %3119  ;;  %2338 = vst [vmem:[#allocation2 + $0x20] sm:$0xff] %v3118_v48 }
 0x609   :  { %v3122_v50 = vpop.eup %3121  ;;  %2335 = vst [vmem:[#allocation2 + $0x8] sm:$0xff] %v3120_v49 }
 0x60a   :  { %2339 = vst [vmem:[#allocation2 + $0x28] sm:$0xff] %v3122_v50 }
 0x62a   :  { %v2204_v55 = vpop.f32.mrb[20].mxu1 }
 0x62b   :  { %v2205_v56 = vadd.f32 %v2204_v55, %v1529_v53  ;;  %v2206_v57 = vpop.f32.mrb[21].mxu1 }
 0x62c   :  { %v2207_v59 = vadd.f32 %v2206_v57, %v1533_v54  ;;  %v2208_v58 = vpop.f32.mrb[22].mxu1 }
 0x62d   :  { %v2619_v60 = vmul.f32 -1.442695, %v2205_v56  ;;  %v2209_v61 = vpop.f32.mrb[23].mxu1 }
 0x62e   :  { %v2620_v62 = vmul.f32 -1.442695, %v2207_v59 }
 0x62f   :  { %3123 = vpow2.f32 %v2619_v60 }
 0x630   :  { %3125 = vpow2.f32 %v2620_v62 }
 0x639   :  { %v3124_v63 = vpop.eup %3123 }
 0x63a   :  { %v3126_v0 = vpop.eup %3125  ;;  %v2315_v1 = vadd.f32 1.0, %v3124_v63 }
 0x63b   :  { %v2316_v2 = vadd.f32 1.0, %v3126_v0 }
 0x63c   :  { %3127 = vrcp.f32 %v2315_v1 }
 0x63d   :  { %3129 = vrcp.f32 %v2316_v2 }
 0x646   :  { %v3128_v5 = vpop.eup %3127 }
 0x647   :  { %v3130_v8 = vpop.eup %3129  ;;  %2336 = vst [vmem:[#allocation2 + $0x10] sm:$0xff] %v3128_v5 }
 0x648   :  { %2337 = vst [vmem:[#allocation2 + $0x18] sm:$0xff] %v3130_v8 }
 0x64a   :  { %v2680_v9 = vpop.f32.mrb[24].mxu1 }
 0x64b   :  { %v2681_v11 = vpop.f32.mrb[25].mxu1 }
 0x64c   :  { %v2682_v12 = vadd.f32 %v2681_v11, %v2680_v9  ;;  %v2683_v13 = vpop.f32.mrb[26].mxu1 }
 0x64d   :  { %v2684_v14 = vpop.f32.mrb[27].mxu1 }
 0x64e   :  { %v2287_v15 = vadd.f32 %v2682_v12, %v1545_v10 }
 0x650   :  { %v2623_v16 = vmul.f32 -1.442695, %v2287_v15 }
 0x652   :  { %3131 = vpow2.f32 %v2623_v16 }
 0x65c   :  { %v3132_v17 = vpop.eup %3131 }
 0x65d   :  { %v2319_v18 = vadd.f32 1.0, %v3132_v17 }
 0x65f   :  { %3133 = vrcp.f32 %v2319_v18 }
 0x669   :  { %v3134_v3 = vpop.eup %3133 }
 0x66a   :  { %2340 = vst.msk [vmem:[#allocation2 + $0x30] sm:$0xff] %vm660_vm0, %v3134_v3 }
 0x66b   :  { %3146 = shalt.err (!%p3143_p4)
}
 0x66c   :  { %s3147_s18 = scalar_lea.hbm %s4133_s13, 896 }
 0x66d   :  { %p3148_p5 = scmp.ne.s32.totalorder %s4133_s13, %s3147_s18  ;;  %p3151_p6 = scmp.lt.u32.totalorder %s3147_s18, %s4133_s13 }
 0x66f   :  { %p3153_p7 = pnand %p3151_p6, %p3148_p5 }
 0x671   :  { %3156 = shalt.err (!%p3153_p7)
}
 0x672   :  { %2350 = dma.vmem_to_hbm [thread:$0]  %s2348_s12, 896, %s4133_s13, [#allocation3]  }
 0x673   :  { %3157 = dma.done.wait [#allocation3], 896  }
 0x674   :  { %3158 = vsyncadd [#allocation3], 4294966400 }
 0x675   :  { %2354 = vsyncpa [#allocation3], 1 }

</bundles_post_ra>
